<compile_context>
chip_gen: v7x
topology: tpu7x:2x2x1
jax: 0.10.0
libtpu: 0.0.40
codegen_flags: <defaults>
</compile_context>

<pallas_src>
import functools

import jax
import jax.numpy as jnp
from jax.experimental import pallas as pl
from jax.experimental.pallas import tpu as pltpu

LANES = 128          # feature-dim padding (lane-dense stores, full MXU columns)
_MiB = 1 << 20


def _round_up(x, m):
    return (x + m - 1) // m * m


def _pad2(x, rows, cols):
    return jnp.pad(x, ((0, rows - x.shape[0]), (0, cols - x.shape[1])))


def _pick_row_tile(n_pad, candidates=(512, 256, 128)):
    # Prefer >= 2 row tiles so the "parallel" axis can shard across 2 TCs (v7x).
    for c in candidates:
        if n_pad % c == 0 and n_pad // c >= 2:
            return c
    for c in candidates:
        if n_pad % c == 0:
            return c
    return min(n_pad, 128)


def _pick_k_tile(n_pad, candidates=(1024, 512, 256, 128)):
    for c in candidates:
        if n_pad % c == 0:
            return c
    return min(n_pad, 128)


def _vmem_limit(working_set_bytes):
    # Derived scoped-VMEM limit: generous headroom over the double-buffered working
    # set, floored at the smallest default (16 MiB) and capped under v7x's 64 MiB.
    return int(min(max(working_set_bytes * 3 // 2 + 4 * _MiB, 16 * _MiB), 56 * _MiB))


# --------------------------------------------------------------------------- #
# Kernels
# --------------------------------------------------------------------------- #
def _project_kernel(x_ref, w_ref, o_ref):
    # XW = X_tile @ [W_l | W_r]  — one lane-dense MXU call with 2*F_out output lanes.
    o_ref[...] = jnp.dot(
        x_ref[...], w_ref[...], preferred_element_type=jnp.float32
    ).astype(o_ref.dtype)


def _sage_agg_kernel(a_ref, xwl_ref, xwr_ref, invdeg_ref, b_ref, o_ref, acc_ref,
                     *, tile_k, xwl_resident, apply_relu):
    k = pl.program_id(1)

    @pl.when(k == 0)
    def _():
        acc_ref[...] = jnp.zeros_like(acc_ref)

    # A is stored as exact small-integer edge counts (1 byte); widen to bf16 on the
    # VPU (free slack in this HBM-bound loop) and accumulate in f32 on the MXU.
    a_tile = a_ref[...].astype(jnp.bfloat16)
    if xwl_resident:
        start = pl.multiple_of(k * tile_k, tile_k)
        xwl = xwl_ref[pl.ds(start, tile_k), :]
    else:
        xwl = xwl_ref[...]
    acc_ref[...] += jnp.dot(a_tile, xwl, preferred_element_type=jnp.float32)

    @pl.when(k == pl.num_programs(1) - 1)
    def _():
        # mean aggregation: exact f32 per-row 1/in_degree scale in the epilogue,
        # then the root term, bias, optional ReLU, cast, lane-dense store.
        out = (acc_ref[...] * invdeg_ref[...]
               + xwr_ref[...].astype(jnp.float32)
               + b_ref[...])
        if apply_relu:
            out = jnp.maximum(out, 0.0)
        o_ref[...] = out.astype(o_ref.dtype)


# --------------------------------------------------------------------------- #
# One fused SAGEConv layer
# --------------------------------------------------------------------------- #
def sage_conv(a_cnt, inv_deg, x, w_cat, bias, *, apply_relu, out_dtype):
    """a_cnt: [Np, Np] int8 edge counts (A[dst, src]); inv_deg: [Np, 1] f32;
    x: [Np, Fin_p] bf16; w_cat: [Fin_p, 2*Fout_p] bf16; bias: [1, Fout_p] f32.
    Returns [Np, Fout_p] in out_dtype."""
    n_pad, f_in_pad = x.shape
    two_f = w_cat.shape[1]
    f_out_pad = two_f // 2

    tile_m = _pick_row_tile(n_pad)
    tile_k = _pick_k_tile(n_pad)

    # ---- projection: XW = X @ [W_l | W_r] ----------------------------------
    proj_vmem = 2 * 2 * (tile_m * f_in_pad + f_in_pad * two_f + tile_m * two_f)
    xw = pl.pallas_call(
        _project_kernel,
        out_shape=jax.ShapeDtypeStruct((n_pad, two_f), jnp.bfloat16),
        grid_spec=pltpu.PrefetchScalarGridSpec(
            num_scalar_prefetch=0,
            grid=(n_pad // tile_m,),
            in_specs=[
                pl.BlockSpec((tile_m, f_in_pad), lambda i: (i, 0)),
                pl.BlockSpec((f_in_pad, two_f), lambda i: (0, 0)),
            ],
            out_specs=pl.BlockSpec((tile_m, two_f), lambda i: (i, 0)),
        ),
        compiler_params=pltpu.CompilerParams(
            dimension_semantics=("parallel",),
            vmem_limit_bytes=_vmem_limit(proj_vmem),
        ),
        cost_estimate=pl.CostEstimate(
            flops=2 * n_pad * f_in_pad * two_f,
            transcendentals=0,
            bytes_accessed=2 * (n_pad * f_in_pad + f_in_pad * two_f + n_pad * two_f),
        ),
    )(x, w_cat)

    # ---- aggregation + combine: out = ReLU?((A @ XW_l)/deg + XW_r + b) ------
    # Keep XW_l resident in VMEM (DMA'd once, revisited across the whole grid)
    # unless it would blow the VMEM budget; otherwise stream it per k tile.
    xwl_resident_bytes = 2 * n_pad * f_out_pad * 2          # double-buffered bf16
    xwl_resident = xwl_resident_bytes <= 16 * _MiB
    if xwl_resident:
        xwl_spec = pl.BlockSpec((n_pad, f_out_pad), lambda i, k: (0, 0))
        xwl_vmem = xwl_resident_bytes
    else:
        xwl_spec = pl.BlockSpec((tile_k, f_out_pad), lambda i, k: (k, 0))
        xwl_vmem = 2 * tile_k * f_out_pad * 2

    out_bytes = jnp.dtype(out_dtype).itemsize
    agg_vmem = (
        2 * tile_m * tile_k * 1                              # A tiles (int8)
        + xwl_vmem                                           # XW_l
        + 2 * tile_m * f_out_pad * 2                         # XW_r tiles (bf16)
        + 2 * tile_m * LANES * 4                             # 1/deg (lane-padded f32)
        + 2 * 8 * f_out_pad * 4                              # bias
        + tile_m * f_out_pad * 4                             # f32 accumulator
        + 2 * tile_m * f_out_pad * out_bytes                 # output tiles
    )

    kernel = functools.partial(_sage_agg_kernel, tile_k=tile_k,
                               xwl_resident=xwl_resident, apply_relu=apply_relu)
    out = pl.pallas_call(
        kernel,
        out_shape=jax.ShapeDtypeStruct((n_pad, f_out_pad), out_dtype),
        grid_spec=pltpu.PrefetchScalarGridSpec(
            num_scalar_prefetch=0,
            grid=(n_pad // tile_m, n_pad // tile_k),         # reduction axis last
            in_specs=[
                pl.BlockSpec((tile_m, tile_k), lambda i, k: (i, k)),      # A tile
                xwl_spec,                                                 # XW_l
                pl.BlockSpec((tile_m, f_out_pad), lambda i, k: (i, 1)),   # XW_r tile
                pl.BlockSpec((tile_m, 1), lambda i, k: (i, 0)),           # 1/in_deg
                pl.BlockSpec((1, f_out_pad), lambda i, k: (0, 0)),        # bias
            ],
            out_specs=pl.BlockSpec((tile_m, f_out_pad), lambda i, k: (i, 0)),
            scratch_shapes=[pltpu.VMEM((tile_m, f_out_pad), jnp.float32)],
        ),
        compiler_params=pltpu.CompilerParams(
            dimension_semantics=("parallel", "arbitrary"),
            vmem_limit_bytes=_vmem_limit(agg_vmem),
        ),
        cost_estimate=pl.CostEstimate(
            flops=2 * n_pad * n_pad * f_out_pad + 3 * n_pad * f_out_pad,
            transcendentals=0,
            bytes_accessed=n_pad * n_pad                      # A (1 byte/elem)
            + 2 * n_pad * f_out_pad                           # XW_l (read once)
            + 2 * n_pad * f_out_pad                           # XW_r
            + 4 * n_pad                                       # 1/deg
            + n_pad * f_out_pad * out_bytes,                  # output
        ),
    )(a_cnt, xw, xw, inv_deg, bias)
    return out


# --------------------------------------------------------------------------- #
# Plain-JAX glue: sparse edge_index -> dense adjacency (built once, already
# padded and in its final 1-byte storage dtype) + f32 inverse in-degree.
# --------------------------------------------------------------------------- #
def build_graph_inputs(edge_index, n_pad):
    src = edge_index[0]
    dst = edge_index[1]
    a_cnt = jnp.zeros((n_pad, n_pad), jnp.int8).at[dst, src].add(
        jnp.ones(src.shape, jnp.int8))
    deg = jnp.zeros((n_pad,), jnp.float32).at[dst].add(1.0)
    inv_deg = (1.0 / jnp.maximum(deg, 1.0)).reshape(n_pad, 1)
    return a_cnt, inv_deg


# --------------------------------------------------------------------------- #
# Full forward
# --------------------------------------------------------------------------- #
@functools.partial(jax.jit, static_argnames=("num_nodes",))
def graphsage_forward(x, edge_index, params, *, num_nodes):
    n, f_in = x.shape
    hidden = params["w_l1"].shape[1]
    f_out = params["w_l2"].shape[1]

    n_pad = _round_up(max(n, num_nodes), LANES)
    f_in_pad = _round_up(f_in, LANES)
    h_pad = _round_up(hidden, LANES)
    o_pad = _round_up(f_out, LANES)

    a_cnt, inv_deg = build_graph_inputs(edge_index, n_pad)
    xp = _pad2(x, n_pad, f_in_pad).astype(jnp.bfloat16)

    w_cat1 = jnp.concatenate(
        [_pad2(params["w_l1"], f_in_pad, h_pad),
         _pad2(params["w_r1"], f_in_pad, h_pad)], axis=1).astype(jnp.bfloat16)
    b1 = _pad2(params["b_l1"], 1, h_pad).astype(jnp.float32)

    w_cat2 = jnp.concatenate(
        [_pad2(params["w_l2"], h_pad, o_pad),
         _pad2(params["w_r2"], h_pad, o_pad)], axis=1).astype(jnp.bfloat16)
    b2 = _pad2(params["b_l2"], 1, o_pad).astype(jnp.float32)

    h = sage_conv(a_cnt, inv_deg, xp, w_cat1, b1,
                  apply_relu=True, out_dtype=jnp.bfloat16)        # conv1 + relu
    out = sage_conv(a_cnt, inv_deg, h, w_cat2, b2,
                    apply_relu=False, out_dtype=jnp.float32)      # conv2
    return out[:n, :f_out]


def init_params(key, in_channels, hidden_channels, out_channels):
    k1, k2, k3, k4 = jax.random.split(key, 4)

    def glorot(k, fan_in, fan_out):
        lim = jnp.sqrt(6.0 / (fan_in + fan_out))
        return jax.random.uniform(k, (fan_in, fan_out), jnp.float32, -lim, lim)

    return {
        "w_l1": glorot(k1, in_channels, hidden_channels),
        "w_r1": glorot(k2, in_channels, hidden_channels),
        "b_l1": jnp.zeros((1, hidden_channels), jnp.float32),
        "w_l2": glorot(k3, hidden_channels, out_channels),
        "w_r2": glorot(k4, hidden_channels, out_channels),
        "b_l2": jnp.zeros((1, out_channels), jnp.float32),
    }


def _reference(x, edge_index, params):
    """Pure-JAX reference mimicking the kernel numerics: bf16 storage, f32
    accumulation, exact 0/1-count adjacency with f32 inverse-degree mean."""
    n = x.shape[0]
    src, dst = edge_index[0], edge_index[1]
    a = jnp.zeros((n, n), jnp.float32).at[dst, src].add(1.0)
    inv_deg = 1.0 / jnp.maximum(a.sum(axis=1, keepdims=True), 1.0)

    def layer(xb, w_l, w_r, b, relu):
        wl = w_l.astype(jnp.bfloat16).astype(jnp.float32)
        wr = w_r.astype(jnp.bfloat16).astype(jnp.float32)
        xwl = (xb @ wl).astype(jnp.bfloat16).astype(jnp.float32)
        xwr = (xb @ wr).astype(jnp.bfloat16).astype(jnp.float32)
        out = (a @ xwl) * inv_deg + xwr + b
        return jnp.maximum(out, 0.0) if relu else out

    xb = x.astype(jnp.bfloat16).astype(jnp.float32)
    h = layer(xb, params["w_l1"], params["w_r1"], params["b_l1"], True)
    hb = h.astype(jnp.bfloat16).astype(jnp.float32)
    return layer(hb, params["w_l2"], params["w_r2"], params["b_l2"], False)


if __name__ == "__main__":
    key = jax.random.PRNGKey(0)
    k_x, k_e, k_p = jax.random.split(key, 3)

    num_nodes = 256
    num_edges = 1024
    in_channels, hidden_channels, out_channels = 32, 64, 32

    x = jax.random.normal(k_x, (num_nodes, in_channels), jnp.float32)
    edge_index = jax.random.randint(k_e, (2, num_edges), 0, num_nodes, jnp.int32)
    params = init_params(k_p, in_channels, hidden_channels, out_channels)

    out = graphsage_forward(x, edge_index, params, num_nodes=num_nodes)
    out = jax.block_until_ready(out)

    ref = _reference(x, edge_index, params)
    assert out.shape == (num_nodes, out_channels)
    max_err = float(jnp.max(jnp.abs(out - ref)))
    assert jnp.allclose(out, ref, atol=1e-2, rtol=1e-2), max_err

    print("KERNEL_OK")
</pallas_src>

<mosaic_0001>
module attributes {stable_mosaic.version = 11 : i64} {
  func.func private @main(%arg0: i32) attributes {dimension_semantics = [#tpu.dimension_semantics<core_parallel>], iteration_bounds = array<i64: 2>, tpu.core_type = #tpu.core_type<sc_scalar_subcore>, window_params = []} {
    return
  }
}

module attributes {stable_mosaic.version = 11 : i64} {
  func.func private @main(%arg0: i32) attributes {dimension_semantics = [#tpu.dimension_semantics<core_parallel>], iteration_bounds = array<i64: 2>, tpu.core_type = #tpu.core_type<sc_scalar_subcore>, window_params = []} {
    return
  }
}

module attributes {stable_mosaic.version = 11 : i64} {
  func.func @_project_kernel(%arg0: i32, %arg1: memref<128x128xbf16, #tpu.memory_space<vmem>>, %arg2: memref<128x256xbf16, #tpu.memory_space<vmem>>, %arg3: memref<128x256xbf16, #tpu.memory_space<vmem>>) attributes {dimension_semantics = [#tpu.dimension_semantics<parallel>], iteration_bounds = array<i64: 2>, scalar_prefetch = 0 : i64, scratch_operands = 0 : i64, tpu.core_type = #tpu.core_type<tc>, window_params = [{transform_indices = @transform_0, window_bounds = array<i64: 128, 128>}, {pipeline_mode = #tpu.pipeline_mode<synchronous>, transform_indices = @transform_1, window_bounds = array<i64: 128, 256>}, {transform_indices = @transform_2, window_bounds = array<i64: 128, 256>}]} {
    %c0 = arith.constant 0 : index
    %c0_0 = arith.constant 0 : index
    %0 = vector.load %arg1[%c0, %c0_0] : memref<128x128xbf16, #tpu.memory_space<vmem>>, vector<128x128xbf16>
    %c0_1 = arith.constant 0 : index
    %c0_2 = arith.constant 0 : index
    %1 = vector.load %arg2[%c0_1, %c0_2] : memref<128x256xbf16, #tpu.memory_space<vmem>>, vector<128x256xbf16>
    %cst = arith.constant dense<0.000000e+00> : vector<128x256xf32>
    %2 = tpu.matmul %0, %1, %cst {dimension_numbers = #tpu.dot_dimension_numbers<[1], [0], [0], [1], [0, 0, 1, 1], [], []>} : vector<128x128xbf16>, vector<128x256xbf16>, vector<128x256xf32> -> vector<128x256xf32>
    %3 = arith.truncf %2 : vector<128x256xf32> to vector<128x256xbf16>
    %c0_3 = arith.constant 0 : index
    %c0_4 = arith.constant 0 : index
    %4 = vector.load %arg3[%c0_3, %c0_4] : memref<128x256xbf16, #tpu.memory_space<vmem>>, vector<128x256xbf16>
    tpu.vector_store %arg3[%c0_3, %c0_4], %3 {strides = array<i32>} : memref<128x256xbf16, #tpu.memory_space<vmem>>, vector<128x256xbf16>,
    return
  }
  func.func @transform_0(%arg0: i32) -> (i32, i32) {
    %c0_i32 = arith.constant 0 : i32
    %c0_i32_0 = arith.constant 0 : i32
    return %arg0, %c0_i32 : i32, i32
  }
  func.func @transform_1(%arg0: i32) -> (i32, i32) {
    %c0_i32 = arith.constant 0 : i32
    %c0_i32_0 = arith.constant 0 : i32
    %c0_i32_1 = arith.constant 0 : i32
    return %c0_i32, %c0_i32_0 : i32, i32
  }
  func.func @transform_2(%arg0: i32) -> (i32, i32) {
    %c0_i32 = arith.constant 0 : i32
    %c0_i32_0 = arith.constant 0 : i32
    return %arg0, %c0_i32 : i32, i32
  }
}

module attributes {stable_mosaic.version = 11 : i64} {
  func.func @_sage_agg_kernel(%arg0: i32, %arg1: i32, %arg2: memref<128x256xi8, #tpu.memory_space<vmem>>, %arg3: memref<256x128xbf16, #tpu.memory_space<vmem>>, %arg4: memref<128x128xbf16, #tpu.memory_space<vmem>>, %arg5: memref<128x1xf32, #tpu.memory_space<vmem>>, %arg6: memref<1x128xf32, #tpu.memory_space<vmem>>, %arg7: memref<128x128xbf16, #tpu.memory_space<vmem>>, %arg8: memref<128x128xf32, #tpu.memory_space<vmem>>) attributes {dimension_semantics = [#tpu.dimension_semantics<parallel>, #tpu.dimension_semantics<arbitrary>], iteration_bounds = array<i64: 2, 1>, scalar_prefetch = 0 : i64, scratch_operands = 1 : i64, tpu.core_type = #tpu.core_type<tc>, window_params = [{transform_indices = @transform_0, window_bounds = array<i64: 128, 256>}, {transform_indices = @transform_1, window_bounds = array<i64: 256, 128>}, {transform_indices = @transform_2, window_bounds = array<i64: 128, 128>}, {transform_indices = @transform_3, window_bounds = array<i64: 128, 1>}, {pipeline_mode = #tpu.pipeline_mode<synchronous>, transform_indices = @transform_4, window_bounds = array<i64: 1, 128>}, {transform_indices = @transform_5, window_bounds = array<i64: 128, 128>}]} {
    %c0_i32 = arith.constant 0 : i32
    %0 = arith.cmpi eq, %arg1, %c0_i32 : i32
    %1 = arith.extui %0 : i1 to i32
    %c0_i32_0 = arith.constant 0 : i32
    %2 = arith.cmpi ne, %1, %c0_i32_0 : i32
    scf.if %2 {
      %cst_9 = arith.constant 0.000000e+00 : f32
      %16 = vector.broadcast %cst_9 : f32 to vector<128x128xf32>
      %c0_10 = arith.constant 0 : index
      %c0_11 = arith.constant 0 : index
      %17 = vector.load %arg8[%c0_10, %c0_11] : memref<128x128xf32, #tpu.memory_space<vmem>>, vector<128x128xf32>
      tpu.vector_store %arg8[%c0_10, %c0_11], %16 {strides = array<i32>} : memref<128x128xf32, #tpu.memory_space<vmem>>, vector<128x128xf32>,
    } else {
    }
    %c0 = arith.constant 0 : index
    %c0_1 = arith.constant 0 : index
    %3 = vector.load %arg2[%c0, %c0_1] : memref<128x256xi8, #tpu.memory_space<vmem>>, vector<128x256xi8>
    %4 = arith.sitofp %3 : vector<128x256xi8> to vector<128x256xbf16>
    %c256_i32 = arith.constant 256 : i32
    %5 = arith.muli %arg1, %c256_i32 : i32
    %6 = tpu.assume_multiple %5, 256 : i32
    %7 = arith.index_cast %6 : i32 to index
    %c0_2 = arith.constant 0 : index
    %8 = vector.load %arg3[%7, %c0_2] : memref<256x128xbf16, #tpu.memory_space<vmem>>, vector<256x128xbf16>
    %c0_3 = arith.constant 0 : index
    %c0_4 = arith.constant 0 : index
    %9 = vector.load %arg8[%c0_3, %c0_4] : memref<128x128xf32, #tpu.memory_space<vmem>>, vector<128x128xf32>
    %cst = arith.constant dense<0.000000e+00> : vector<128x128xf32>
    %10 = tpu.matmul %4, %8, %cst {dimension_numbers = #tpu.dot_dimension_numbers<[1], [0], [0], [1], [0, 0, 1, 1], [], []>} : vector<128x256xbf16>, vector<256x128xbf16>, vector<128x128xf32> -> vector<128x128xf32>
    %11 = arith.addf %9, %10 : vector<128x128xf32>
    %c0_5 = arith.constant 0 : index
    %c0_6 = arith.constant 0 : index
    %12 = vector.load %arg8[%c0_5, %c0_6] : memref<128x128xf32, #tpu.memory_space<vmem>>, vector<128x128xf32>
    tpu.vector_store %arg8[%c0_5, %c0_6], %11 {strides = array<i32>} : memref<128x128xf32, #tpu.memory_space<vmem>>, vector<128x128xf32>,
    %c0_i32_7 = arith.constant 0 : i32
    %13 = arith.cmpi eq, %arg1, %c0_i32_7 : i32
    %14 = arith.extui %13 : i1 to i32
    %c0_i32_8 = arith.constant 0 : i32
    %15 = arith.cmpi ne, %14, %c0_i32_8 : i32
    scf.if %15 {
      %c0_9 = arith.constant 0 : index
      %c0_10 = arith.constant 0 : index
      %16 = vector.load %arg8[%c0_9, %c0_10] : memref<128x128xf32, #tpu.memory_space<vmem>>, vector<128x128xf32>
      %c0_11 = arith.constant 0 : index
      %c0_12 = arith.constant 0 : index
      %17 = vector.load %arg5[%c0_11, %c0_12] : memref<128x1xf32, #tpu.memory_space<vmem>>, vector<128x1xf32>
      %18 = vector.broadcast %17 : vector<128x1xf32> to vector<128x128xf32>
      %19 = arith.mulf %16, %18 : vector<128x128xf32>
      %c0_13 = arith.constant 0 : index
      %c0_14 = arith.constant 0 : index
      %20 = vector.load %arg4[%c0_13, %c0_14] : memref<128x128xbf16, #tpu.memory_space<vmem>>, vector<128x128xbf16>
      %21 = arith.extf %20 : vector<128x128xbf16> to vector<128x128xf32>
      %22 = arith.addf %19, %21 : vector<128x128xf32>
      %c0_15 = arith.constant 0 : index
      %c0_16 = arith.constant 0 : index
      %23 = vector.load %arg6[%c0_15, %c0_16] : memref<1x128xf32, #tpu.memory_space<vmem>>, vector<1x128xf32>
      %24 = vector.broadcast %23 : vector<1x128xf32> to vector<128x128xf32>
      %25 = arith.addf %22, %24 : vector<128x128xf32>
      %cst_17 = arith.constant 0.000000e+00 : f32
      %26 = vector.broadcast %cst_17 : f32 to vector<128x128xf32>
      %27 = arith.maximumf %25, %26 : vector<128x128xf32>
      %28 = arith.truncf %27 : vector<128x128xf32> to vector<128x128xbf16>
      %c0_18 = arith.constant 0 : index
      %c0_19 = arith.constant 0 : index
      %29 = vector.load %arg7[%c0_18, %c0_19] : memref<128x128xbf16, #tpu.memory_space<vmem>>, vector<128x128xbf16>
      tpu.vector_store %arg7[%c0_18, %c0_19], %28 {strides = array<i32>} : memref<128x128xbf16, #tpu.memory_space<vmem>>, vector<128x128xbf16>,
    } else {
    }
    return
  }
  func.func @transform_0(%arg0: i32, %arg1: i32) -> (i32, i32) {
    %c0_i32 = arith.constant 0 : i32
    return %arg0, %arg1 : i32, i32
  }
  func.func @transform_1(%arg0: i32, %arg1: i32) -> (i32, i32) {
    %c0_i32 = arith.constant 0 : i32
    %c0_i32_0 = arith.constant 0 : i32
    %c0_i32_1 = arith.constant 0 : i32
    return %c0_i32, %c0_i32_0 : i32, i32
  }
  func.func @transform_2(%arg0: i32, %arg1: i32) -> (i32, i32) {
    %c1_i32 = arith.constant 1 : i32
    %c0_i32 = arith.constant 0 : i32
    return %arg0, %c1_i32 : i32, i32
  }
  func.func @transform_3(%arg0: i32, %arg1: i32) -> (i32, i32) {
    %c0_i32 = arith.constant 0 : i32
    %c0_i32_0 = arith.constant 0 : i32
    return %arg0, %c0_i32 : i32, i32
  }
  func.func @transform_4(%arg0: i32, %arg1: i32) -> (i32, i32) {
    %c0_i32 = arith.constant 0 : i32
    %c0_i32_0 = arith.constant 0 : i32
    %c0_i32_1 = arith.constant 0 : i32
    return %c0_i32, %c0_i32_0 : i32, i32
  }
  func.func @transform_5(%arg0: i32, %arg1: i32) -> (i32, i32) {
    %c0_i32 = arith.constant 0 : i32
    %c0_i32_0 = arith.constant 0 : i32
    return %arg0, %c0_i32 : i32, i32
  }
}

module attributes {stable_mosaic.version = 11 : i64} {
  func.func @_sage_agg_kernel(%arg0: i32, %arg1: i32, %arg2: memref<128x256xi8, #tpu.memory_space<vmem>>, %arg3: memref<256x128xbf16, #tpu.memory_space<vmem>>, %arg4: memref<128x128xbf16, #tpu.memory_space<vmem>>, %arg5: memref<128x1xf32, #tpu.memory_space<vmem>>, %arg6: memref<1x128xf32, #tpu.memory_space<vmem>>, %arg7: memref<128x128xf32, #tpu.memory_space<vmem>>, %arg8: memref<128x128xf32, #tpu.memory_space<vmem>>) attributes {dimension_semantics = [#tpu.dimension_semantics<parallel>, #tpu.dimension_semantics<arbitrary>], iteration_bounds = array<i64: 2, 1>, scalar_prefetch = 0 : i64, scratch_operands = 1 : i64, tpu.core_type = #tpu.core_type<tc>, window_params = [{transform_indices = @transform_0, window_bounds = array<i64: 128, 256>}, {transform_indices = @transform_1, window_bounds = array<i64: 256, 128>}, {transform_indices = @transform_2, window_bounds = array<i64: 128, 128>}, {transform_indices = @transform_3, window_bounds = array<i64: 128, 1>}, {pipeline_mode = #tpu.pipeline_mode<synchronous>, transform_indices = @transform_4, window_bounds = array<i64: 1, 128>}, {transform_indices = @transform_5, window_bounds = array<i64: 128, 128>}]} {
    %c0_i32 = arith.constant 0 : i32
    %0 = arith.cmpi eq, %arg1, %c0_i32 : i32
    %1 = arith.extui %0 : i1 to i32
    %c0_i32_0 = arith.constant 0 : i32
    %2 = arith.cmpi ne, %1, %c0_i32_0 : i32
    scf.if %2 {
      %cst_9 = arith.constant 0.000000e+00 : f32
      %16 = vector.broadcast %cst_9 : f32 to vector<128x128xf32>
      %c0_10 = arith.constant 0 : index
      %c0_11 = arith.constant 0 : index
      %17 = vector.load %arg8[%c0_10, %c0_11] : memref<128x128xf32, #tpu.memory_space<vmem>>, vector<128x128xf32>
      tpu.vector_store %arg8[%c0_10, %c0_11], %16 {strides = array<i32>} : memref<128x128xf32, #tpu.memory_space<vmem>>, vector<128x128xf32>,
    } else {
    }
    %c0 = arith.constant 0 : index
    %c0_1 = arith.constant 0 : index
    %3 = vector.load %arg2[%c0, %c0_1] : memref<128x256xi8, #tpu.memory_space<vmem>>, vector<128x256xi8>
    %4 = arith.sitofp %3 : vector<128x256xi8> to vector<128x256xbf16>
    %c256_i32 = arith.constant 256 : i32
    %5 = arith.muli %arg1, %c256_i32 : i32
    %6 = tpu.assume_multiple %5, 256 : i32
    %7 = arith.index_cast %6 : i32 to index
    %c0_2 = arith.constant 0 : index
    %8 = vector.load %arg3[%7, %c0_2] : memref<256x128xbf16, #tpu.memory_space<vmem>>, vector<256x128xbf16>
    %c0_3 = arith.constant 0 : index
    %c0_4 = arith.constant 0 : index
    %9 = vector.load %arg8[%c0_3, %c0_4] : memref<128x128xf32, #tpu.memory_space<vmem>>, vector<128x128xf32>
    %cst = arith.constant dense<0.000000e+00> : vector<128x128xf32>
    %10 = tpu.matmul %4, %8, %cst {dimension_numbers = #tpu.dot_dimension_numbers<[1], [0], [0], [1], [0, 0, 1, 1], [], []>} : vector<128x256xbf16>, vector<256x128xbf16>, vector<128x128xf32> -> vector<128x128xf32>
    %11 = arith.addf %9, %10 : vector<128x128xf32>
    %c0_5 = arith.constant 0 : index
    %c0_6 = arith.constant 0 : index
    %12 = vector.load %arg8[%c0_5, %c0_6] : memref<128x128xf32, #tpu.memory_space<vmem>>, vector<128x128xf32>
    tpu.vector_store %arg8[%c0_5, %c0_6], %11 {strides = array<i32>} : memref<128x128xf32, #tpu.memory_space<vmem>>, vector<128x128xf32>,
    %c0_i32_7 = arith.constant 0 : i32
    %13 = arith.cmpi eq, %arg1, %c0_i32_7 : i32
    %14 = arith.extui %13 : i1 to i32
    %c0_i32_8 = arith.constant 0 : i32
    %15 = arith.cmpi ne, %14, %c0_i32_8 : i32
    scf.if %15 {
      %c0_9 = arith.constant 0 : index
      %c0_10 = arith.constant 0 : index
      %16 = vector.load %arg8[%c0_9, %c0_10] : memref<128x128xf32, #tpu.memory_space<vmem>>, vector<128x128xf32>
      %c0_11 = arith.constant 0 : index
      %c0_12 = arith.constant 0 : index
      %17 = vector.load %arg5[%c0_11, %c0_12] : memref<128x1xf32, #tpu.memory_space<vmem>>, vector<128x1xf32>
      %18 = vector.broadcast %17 : vector<128x1xf32> to vector<128x128xf32>
      %19 = arith.mulf %16, %18 : vector<128x128xf32>
      %c0_13 = arith.constant 0 : index
      %c0_14 = arith.constant 0 : index
      %20 = vector.load %arg4[%c0_13, %c0_14] : memref<128x128xbf16, #tpu.memory_space<vmem>>, vector<128x128xbf16>
      %21 = arith.extf %20 : vector<128x128xbf16> to vector<128x128xf32>
      %22 = arith.addf %19, %21 : vector<128x128xf32>
      %c0_15 = arith.constant 0 : index
      %c0_16 = arith.constant 0 : index
      %23 = vector.load %arg6[%c0_15, %c0_16] : memref<1x128xf32, #tpu.memory_space<vmem>>, vector<1x128xf32>
      %24 = vector.broadcast %23 : vector<1x128xf32> to vector<128x128xf32>
      %25 = arith.addf %22, %24 : vector<128x128xf32>
      %c0_17 = arith.constant 0 : index
      %c0_18 = arith.constant 0 : index
      %26 = vector.load %arg7[%c0_17, %c0_18] : memref<128x128xf32, #tpu.memory_space<vmem>>, vector<128x128xf32>
      tpu.vector_store %arg7[%c0_17, %c0_18], %25 {strides = array<i32>} : memref<128x128xf32, #tpu.memory_space<vmem>>, vector<128x128xf32>,
    } else {
    }
    return
  }
  func.func @transform_0(%arg0: i32, %arg1: i32) -> (i32, i32) {
    %c0_i32 = arith.constant 0 : i32
    return %arg0, %arg1 : i32, i32
  }
  func.func @transform_1(%arg0: i32, %arg1: i32) -> (i32, i32) {
    %c0_i32 = arith.constant 0 : i32
    %c0_i32_0 = arith.constant 0 : i32
    %c0_i32_1 = arith.constant 0 : i32
    return %c0_i32, %c0_i32_0 : i32, i32
  }
  func.func @transform_2(%arg0: i32, %arg1: i32) -> (i32, i32) {
    %c1_i32 = arith.constant 1 : i32
    %c0_i32 = arith.constant 0 : i32
    return %arg0, %c1_i32 : i32, i32
  }
  func.func @transform_3(%arg0: i32, %arg1: i32) -> (i32, i32) {
    %c0_i32 = arith.constant 0 : i32
    %c0_i32_0 = arith.constant 0 : i32
    return %arg0, %c0_i32 : i32, i32
  }
  func.func @transform_4(%arg0: i32, %arg1: i32) -> (i32, i32) {
    %c0_i32 = arith.constant 0 : i32
    %c0_i32_0 = arith.constant 0 : i32
    %c0_i32_1 = arith.constant 0 : i32
    return %c0_i32, %c0_i32_0 : i32, i32
  }
  func.func @transform_5(%arg0: i32, %arg1: i32) -> (i32, i32) {
    %c0_i32 = arith.constant 0 : i32
    %c0_i32_0 = arith.constant 0 : i32
    return %arg0, %c0_i32 : i32, i32
  }
}

</mosaic_0001>

<bundles_post_ra>
// kernel: graphsage_forward.4
= control target key start
LH: loop header
LB: loop body
LE: loop exit
PB: predicated region body
PF: predicated region fallthrough
CT: control target
= control target key end

     0   :  { %s743_s9 = smov 0   ;;  %s848_s0 = inlined_call_operand.vmem [shape: bf16[256,128], index: 0, kind: input, shape index: {}]   ;;  %s849_s1 = inlined_call_operand.vmem [shape: bf16[128,256], index: 1, kind: input, shape index: {}]   ;;  %s850_s2 = inlined_call_operand.vmem [shape: bf16[256,256], index: 2, kind: output, shape index: {}]  }
   0x1 LB: > { %s593_s10 = sadd.s32 4294967295, %s725_s9   ;;  %p597_p0 = scmp.ge.s32.totalorder %s725_s9, 1  ;;  %s725_s9 = sphi %s743_s9, %s12_s9  }
   0x2   : > { %p113_p1 = scmp.lt.s32.totalorder %s725_s9, 3 }
   0x4   : > { %p114_p2 = pnand %p597_p0, %p113_p1 }
   0x5   : > { %v687_v0 = vld [vmem:[%s849_s1 + $0x4] ss:$8 sps:$4 sm:$0xff] (!%p114_p2)   ;;  %s598_s13 = sshll.u32 (!%p114_p2), %s593_s10, 4  ;;  %v689_v1 = vld [vmem:[%s849_s1] ss:$8 sps:$4 sm:$0xff] (!%p114_p2)   ;;  %v727_v2 = vmov (!%p114_p2), 0  }
   0x6   : > { %117 = sbr.rel (%p114_p2) target bundleno = 281 (0x119), region = 28  ;;  %342 = vmatprep.mubr.bf16.mxu0 (!%p114_p2), %v727_v2  ;;  %382 = vmatprep.mubr.bf16.mxu1 (!%p114_p2), %v727_v2  ;;  %p137_p3 = scmp.lt.s32.totalorder (!%p114_p2), %s598_s13, 31  ;;  %v690_v3 = vld [vmem:[%s849_s1 + $0x14] ss:$8 sps:$4 sm:$0xff] (!%p114_p2)   ;;  %v692_v4 = vld [vmem:[%s849_s1 + $0x10] ss:$8 sps:$4 sm:$0xff] (!%p114_p2)  }
   0x7   : > { %310 = vmatprep.subr.bf16.mxu0 (!%p114_p2), %v687_v0  ;;  %662 = vmatprep.subr.bf16.mxu1 (!%p114_p2), %v687_v0  ;;  %v693_v5 = vld [vmem:[%s849_s1 + $0x24] ss:$8 sps:$4 sm:$0xff] (!%p114_p2)   ;;  %v695_v6 = vld [vmem:[%s849_s1 + $0x20] ss:$8 sps:$4 sm:$0xff] (!%p114_p2)   ;;  %v696_v7 = vld [vmem:[%s849_s1 + $0x34] ss:$8 sps:$4 sm:$0xff] (!%p114_p2)  }
   0x8   : > { %311 = vmatpush1.bf16.msra.mxu0 (!%p114_p2), %v689_v1  ;;  %670 = vmatpush1.bf16.msra.mxu1 (!%p114_p2), %v689_v1  ;;  %v698_v8 = vld [vmem:[%s849_s1 + $0x30] ss:$8 sps:$4 sm:$0xff] (!%p114_p2)   ;;  %v699_v9 = vld [vmem:[%s849_s1 + $0x44] ss:$8 sps:$4 sm:$0xff] (!%p114_p2)   ;;  %v701_v10 = vld [vmem:[%s849_s1 + $0x40] ss:$8 sps:$4 sm:$0xff] (!%p114_p2)  }
   0x9   : > { %312 = vmatprep.subr.bf16.mxu0 (!%p114_p2), %v690_v3  ;;  %663 = vmatprep.subr.bf16.mxu1 (!%p114_p2), %v690_v3  ;;  %v702_v11 = vld [vmem:[%s849_s1 + $0x54] ss:$8 sps:$4 sm:$0xff] (!%p114_p2)   ;;  %v704_v12 = vld [vmem:[%s849_s1 + $0x50] ss:$8 sps:$4 sm:$0xff] (!%p114_p2)   ;;  %v705_v13 = vld [vmem:[%s849_s1 + $0x64] ss:$8 sps:$4 sm:$0xff] (!%p114_p2)  }
   0xa   : > { %v707_v14 = vld [vmem:[%s849_s1 + $0x60] ss:$8 sps:$4 sm:$0xff] (!%p114_p2)   ;;  %v708_v15 = vld [vmem:[%s849_s1 + $0x74] ss:$8 sps:$4 sm:$0xff] (!%p114_p2)   ;;  %v710_v16 = vld [vmem:[%s849_s1 + $0x70] ss:$8 sps:$4 sm:$0xff] (!%p114_p2)  }
   0xc   : > { %313 = vmatpush1.bf16.msra.mxu0 (!%p114_p2), %v692_v4  ;;  %671 = vmatpush1.bf16.msra.mxu1 (!%p114_p2), %v692_v4 }
   0xd   : > { %s852_s13 = smov (!%p137_p3, %s598_s13), 31  ;;  %314 = vmatprep.subr.bf16.mxu0 %v693_v5  ;;  %664 = vmatprep.subr.bf16.mxu1 %v693_v5 }
   0xe   : > { %s599_s22 = sshll.u32 %s852_s13, 2 }
   0xf   : > { %s780_s29 = scalar_lea.vmem %s848_s0, %s599_s22  ;;  %s645_s22 = sshll.u32 %s852_s13, 3 }
  0x10   : > { %315 = vmatpush1.bf16.msra.mxu0 %v695_v6  ;;  %672 = vmatpush1.bf16.msra.mxu1 %v695_v6  ;;  %v711_v17 = vld [vmem:[%s780_s29] sm:$0xff]   ;;  %v713_v19 = vld [vmem:[%s780_s29 + $0x8] sm:$0xff]   ;;  %v715_v21 = vld [vmem:[%s780_s29 + $0x10] sm:$0xff]   ;;  %s827_s25 = scalar_lea.vmem %s850_s2, %s645_s22 }
  0x11   : > { %316 = vmatprep.subr.bf16.mxu0 %v696_v7  ;;  %665 = vmatprep.subr.bf16.mxu1 %v696_v7  ;;  %v712_v18 = vld [vmem:[%s780_s29 + $0x20] sm:$0xff]   ;;  %v714_v20 = vld [vmem:[%s780_s29 + $0x28] sm:$0xff]   ;;  %v716_v22 = vld [vmem:[%s780_s29 + $0x30] sm:$0xff]  }
  0x12   : > { %v717_v23 = vld [vmem:[%s780_s29 + $0x18] sm:$0xff]  }
  0x13   : > { %v718_v24 = vld [vmem:[%s780_s29 + $0x38] sm:$0xff]  }
  0x14   : > { %317 = vmatpush1.bf16.msra.mxu0 %v698_v8  ;;  %673 = vmatpush1.bf16.msra.mxu1 %v698_v8 }
  0x15   : > { %318 = vmatprep.subr.bf16.mxu0 %v699_v9  ;;  %666 = vmatprep.subr.bf16.mxu1 %v699_v9 }
  0x18   : > { %319 = vmatpush1.bf16.msra.mxu0 %v701_v10  ;;  %674 = vmatpush1.bf16.msra.mxu1 %v701_v10 }
  0x19   : > { %320 = vmatprep.subr.bf16.mxu0 %v702_v11  ;;  %667 = vmatprep.subr.bf16.mxu1 %v702_v11 }
  0x1c   : > { %321 = vmatpush1.bf16.msra.mxu0 %v704_v12  ;;  %675 = vmatpush1.bf16.msra.mxu1 %v704_v12 }
  0x1d   : > { %322 = vmatprep.subr.bf16.mxu0 %v705_v13  ;;  %668 = vmatprep.subr.bf16.mxu1 %v705_v13 }
  0x20   : > { %323 = vmatpush1.bf16.msra.mxu0 %v707_v14  ;;  %676 = vmatpush1.bf16.msra.mxu1 %v707_v14 }
  0x21   : > { %324 = vmatprep.subr.bf16.mxu0 %v708_v15  ;;  %669 = vmatprep.subr.bf16.mxu1 %v708_v15 }
  0x24   : > { %325 = vmatpush1.bf16.msra.mxu0 %v710_v16  ;;  %677 = vmatpush1.bf16.msra.mxu1 %v710_v16 }
  0x27   : > { %343 = vmatmul.mubr.bf16.vlgmr.msra.gmra.mrb[0].mxu0 %v711_v17  ;;  %383 = vmatmul.mubr.bf16.vlgmr.msra.gmra.mrb[0].mxu1 %v712_v18 }
  0x28   : > { %352 = vmatprep.mubr.bf16.mxu0 %v727_v2  ;;  %392 = vmatprep.mubr.bf16.mxu1 %v727_v2 }
  0x2f   : > { %353 = vmatmul.mubr.bf16.gmra.mrb[4].mxu0 %v713_v19  ;;  %393 = vmatmul.mubr.bf16.gmra.mrb[4].mxu1 %v714_v20 }
  0x30   : > { %362 = vmatprep.mubr.bf16.mxu0 %v727_v2  ;;  %402 = vmatprep.mubr.bf16.mxu1 %v727_v2 }
  0x37   : > { %363 = vmatmul.mubr.bf16.gmra.mrb[8].mxu0 %v715_v21  ;;  %403 = vmatmul.mubr.bf16.gmra.mrb[8].mxu1 %v716_v22 }
  0x38   : > { %372 = vmatprep.mubr.bf16.mxu0 %v727_v2  ;;  %412 = vmatprep.mubr.bf16.mxu1 %v727_v2 }
  0x3f   : > { %373 = vmatmul.mubr.bf16.gmra.mrb[12].mxu0 %v717_v23  ;;  %413 = vmatmul.mubr.bf16.gmra.mrb[12].mxu1 %v718_v24 }
  0xfa   : > { %v344_v25 = vpop.f32.mrb[0].mxu0  ;;  %v384_v26 = vpop.f32.mrb[0].mxu1 }
  0xfb   : > { %v346_v27 = vpop.f32.mrb[1].mxu0  ;;  %v386_v28 = vpop.f32.mrb[1].mxu1 }
  0xfc   : > { %v646_v29 = vpack.c.bf16 %v346_v27, %v344_v25  ;;  %v654_v30 = vpack.c.bf16 %v386_v28, %v384_v26  ;;  %v348_v31 = vpop.f32.mrb[2].mxu0  ;;  %v388_v32 = vpop.f32.mrb[2].mxu1 }
  0xfd   : > { %v350_v33 = vpop.f32.mrb[3].mxu0  ;;  %v390_v34 = vpop.f32.mrb[3].mxu1 }
  0xfe   : > { %519 = vst [vmem:[%s827_s25] sm:$0xff] %v646_v29  ;;  %527 = vst [vmem:[%s827_s25 + $0x40] sm:$0xff] %v654_v30  ;;  %v647_v35 = vpack.c.bf16 %v350_v33, %v348_v31  ;;  %v655_v36 = vpack.c.bf16 %v390_v34, %v388_v32 }
 0x100   : > { %520 = vst [vmem:[%s827_s25 + $0x8] sm:$0xff] %v647_v35  ;;  %528 = vst [vmem:[%s827_s25 + $0x48] sm:$0xff] %v655_v36 }
 0x102   : > { %v354_v37 = vpop.f32.mrb[4].mxu0  ;;  %v394_v38 = vpop.f32.mrb[4].mxu1 }
 0x103   : > { %v356_v39 = vpop.f32.mrb[5].mxu0  ;;  %v396_v40 = vpop.f32.mrb[5].mxu1 }
 0x104   : > { %v648_v41 = vpack.c.bf16 %v356_v39, %v354_v37  ;;  %v656_v42 = vpack.c.bf16 %v396_v40, %v394_v38  ;;  %v358_v43 = vpop.f32.mrb[6].mxu0  ;;  %v398_v44 = vpop.f32.mrb[6].mxu1 }
 0x105   : > { %v360_v45 = vpop.f32.mrb[7].mxu0  ;;  %v400_v46 = vpop.f32.mrb[7].mxu1 }
 0x106   : > { %521 = vst [vmem:[%s827_s25 + $0x10] sm:$0xff] %v648_v41  ;;  %529 = vst [vmem:[%s827_s25 + $0x50] sm:$0xff] %v656_v42  ;;  %v649_v47 = vpack.c.bf16 %v360_v45, %v358_v43  ;;  %v657_v48 = vpack.c.bf16 %v400_v46, %v398_v44 }
 0x108   : > { %522 = vst [vmem:[%s827_s25 + $0x18] sm:$0xff] %v649_v47  ;;  %530 = vst [vmem:[%s827_s25 + $0x58] sm:$0xff] %v657_v48 }
 0x10a   : > { %v364_v49 = vpop.f32.mrb[8].mxu0  ;;  %v404_v50 = vpop.f32.mrb[8].mxu1 }
 0x10b   : > { %v366_v51 = vpop.f32.mrb[9].mxu0  ;;  %v406_v52 = vpop.f32.mrb[9].mxu1 }
 0x10c   : > { %v650_v53 = vpack.c.bf16 %v366_v51, %v364_v49  ;;  %v658_v54 = vpack.c.bf16 %v406_v52, %v404_v50  ;;  %v368_v55 = vpop.f32.mrb[10].mxu0  ;;  %v408_v56 = vpop.f32.mrb[10].mxu1 }
 0x10d   : > { %v370_v57 = vpop.f32.mrb[11].mxu0  ;;  %v410_v58 = vpop.f32.mrb[11].mxu1 }
 0x10e   : > { %523 = vst [vmem:[%s827_s25 + $0x20] sm:$0xff] %v650_v53  ;;  %531 = vst [vmem:[%s827_s25 + $0x60] sm:$0xff] %v658_v54  ;;  %v651_v59 = vpack.c.bf16 %v370_v57, %v368_v55  ;;  %v659_v60 = vpack.c.bf16 %v410_v58, %v408_v56 }
 0x110   : > { %524 = vst [vmem:[%s827_s25 + $0x28] sm:$0xff] %v651_v59  ;;  %532 = vst [vmem:[%s827_s25 + $0x68] sm:$0xff] %v659_v60 }
 0x112   : > { %v374_v61 = vpop.f32.mrb[12].mxu0  ;;  %v414_v62 = vpop.f32.mrb[12].mxu1 }
 0x113   : > { %v376_v63 = vpop.f32.mrb[13].mxu0  ;;  %v416_v0 = vpop.f32.mrb[13].mxu1 }
 0x114   : > { %v652_v1 = vpack.c.bf16 %v376_v63, %v374_v61  ;;  %v660_v2 = vpack.c.bf16 %v416_v0, %v414_v62  ;;  %v378_v3 = vpop.f32.mrb[14].mxu0  ;;  %v418_v4 = vpop.f32.mrb[14].mxu1 }
 0x115   : > { %v380_v5 = vpop.f32.mrb[15].mxu0  ;;  %v420_v6 = vpop.f32.mrb[15].mxu1 }
 0x116   : > { %525 = vst [vmem:[%s827_s25 + $0x30] sm:$0xff] %v652_v1  ;;  %533 = vst [vmem:[%s827_s25 + $0x70] sm:$0xff] %v660_v2  ;;  %v653_v7 = vpack.c.bf16 %v380_v5, %v378_v3  ;;  %v661_v8 = vpack.c.bf16 %v420_v6, %v418_v4 }
 0x118   : > { %526 = vst [vmem:[%s827_s25 + $0x38] sm:$0xff] %v653_v7  ;;  %534 = vst [vmem:[%s827_s25 + $0x78] sm:$0xff] %v661_v8 }
 0x119 PF: > { %s12_s9 = sadd.s32 1, %s725_s9  }
 0x11a   : > { %p9_p4 = scmp.ge.s32.totalorder %s12_s9, 4  }
 0x11c   :  { %11 = sbr.rel (!%p9_p4) target bundleno = 1 (0x1), region = 58 }

// kernel: graphsage_forward.5
= control target key start
LH: loop header
LB: loop body
LE: loop exit
PB: predicated region body
PF: predicated region fallthrough
CT: control target
= control target key end

     0   :  { %s1693_s18 = smov 0   ;;  %s1695_s19 = smov 0   ;;  %s1985_s0 = inlined_call_operand.vmem [shape: s8[256,256], index: 0, kind: input, shape index: {}]   ;;  %s1986_s1 = inlined_call_operand.vmem [shape: bf16[256,256], index: 1, kind: input, shape index: {}, may-alias: {1,2}]   ;;  %s1987_s2 = inlined_call_operand.vmem [shape: bf16[256,256], index: 2, kind: input, shape index: {}, may-alias: {1,2}]   ;;  %s1988_s3 = inlined_call_operand.vmem [shape: f32[256,1], index: 3, kind: input, shape index: {}]   ;;  %s1989_s4 = inlined_call_operand.vmem [shape: f32[1,128], index: 4, kind: input, shape index: {}]   ;;  %s1990_s5 = inlined_call_operand.vmem [shape: bf16[256,128], index: 5, kind: output, shape index: {}]  }
   0x1   :  { %s1697_s20 = smov 0   ;;  %s1699_s21 = smov 0  }
   0x2   :  { %s1701_s22 = smov 0  }
   0x3 LB: > { %s1311_s23 = sadd.s32 4294967295, %s1660_s22   ;;  %s27_s24 = sadd.s32 1, %s1656_s21  ;;  %s1660_s22 = sphi %s1701_s22, %s15_s22   ;;  %s1656_s21 = sphi %s1699_s21, %s1996_s21   ;;  %s1652_s20 = sphi %s1697_s20, %s1995_s20   ;;  %s1648_s19 = sphi %s1695_s19, %s1994_s19   ;;  %s1644_s18 = sphi %s1693_s18, %s1993_s18  }
   0x4   : > { %p29_p0 = scmp.ge.s32.totalorder %s27_s24, 2  ;;  %s83_s25 = sadd.s32 1, %s1648_s19 }
   0x5   : > { %p90_p1 = scmp.ne.s32.totalorder %s1648_s19, %s1644_s18  ;;  %p91_p2 = scmp.eq.s32.totalorder %s1660_s22, 0 }
   0x6   : > { %s1998_s24 = smov (%p29_p0, %s27_s24), 0  ;;  %p1313_p4 = scmp.ge.s32.totalorder %s1660_s22, 1 }
   0x7   : > { %p1726_p3 = por %p91_p2, %p90_p1  ;;  %s80_s27 = ssub.s32 %s1656_s21, %s1998_s24 }
   0x8   : > { %p180_p5 = scmp.lt.s32.totalorder %s1660_s22, 3  ;;  %p81_p6 = scmp.eq.s32.totalorder %s80_s27, 0 }
   0xa   : > { %p1734_p7 = pnand %p1313_p4, %p180_p5 }
   0xb   : > { %s1739_s29 = scalar_select %p81_p6, %s1648_s19, %s83_s25  }
   0xc   : > { %184 = sbr.rel (%p1734_p7) target bundleno = 41 (0x29), region = 12  ;;  %p1314_p8 = scmp.ne.s32.totalorder (!%p1734_p7), %s1311_s23, 0 }
  0x13   : > { %188 = sbr.rel (%p1314_p8) target bundleno = 41 (0x29), region = 16  ;;  %v204_v0 = vld [vmem:[%s1986_s1] sm:$0xf] (!%p1314_p8)  ;;  %v206_v1 = vld [vmem:[%s1986_s1 + $0x8] sm:$0xf] (!%p1314_p8) }
  0x14   : > { %v208_v2 = vld [vmem:[%s1986_s1 + $0x10] sm:$0xf] (!%p1314_p8)  ;;  %205 = vst [vmem:[#allocation3] sm:$0xf] (!%p1314_p8), %v204_v0  ;;  %207 = vst [vmem:[#allocation3 + $0x4] sm:$0xf] (!%p1314_p8), %v206_v1 }
  0x15   : > { %209 = vst [vmem:[#allocation3 + $0x8] sm:$0xf] (!%p1314_p8), %v208_v2  ;;  %v210_v3 = vld [vmem:[%s1986_s1 + $0x18] sm:$0xf] (!%p1314_p8)  ;;  %v212_v4 = vld [vmem:[%s1986_s1 + $0x20] sm:$0xf] (!%p1314_p8) }
  0x16   : > { %v214_v5 = vld [vmem:[%s1986_s1 + $0x28] sm:$0xf] (!%p1314_p8)  ;;  %211 = vst [vmem:[#allocation3 + $0xc] sm:$0xf] (!%p1314_p8), %v210_v3  ;;  %213 = vst [vmem:[#allocation3 + $0x10] sm:$0xf] (!%p1314_p8), %v212_v4 }
  0x17   : > { %215 = vst [vmem:[#allocation3 + $0x14] sm:$0xf] (!%p1314_p8), %v214_v5  ;;  %v216_v6 = vld [vmem:[%s1986_s1 + $0x30] sm:$0xf] (!%p1314_p8)  ;;  %v218_v7 = vld [vmem:[%s1986_s1 + $0x38] sm:$0xf] (!%p1314_p8) }
  0x18   : > { %v220_v8 = vld [vmem:[%s1986_s1 + $0x40] sm:$0xf] (!%p1314_p8)  ;;  %217 = vst [vmem:[#allocation3 + $0x18] sm:$0xf] (!%p1314_p8), %v216_v6  ;;  %219 = vst [vmem:[#allocation3 + $0x1c] sm:$0xf] (!%p1314_p8), %v218_v7 }
  0x19   : > { %221 = vst [vmem:[#allocation3 + $0x20] sm:$0xf] (!%p1314_p8), %v220_v8  ;;  %v222_v9 = vld [vmem:[%s1986_s1 + $0x48] sm:$0xf] (!%p1314_p8)  ;;  %v224_v10 = vld [vmem:[%s1986_s1 + $0x50] sm:$0xf] (!%p1314_p8) }
  0x1a   : > { %v226_v11 = vld [vmem:[%s1986_s1 + $0x58] sm:$0xf]  ;;  %223 = vst [vmem:[#allocation3 + $0x24] sm:$0xf] %v222_v9  ;;  %225 = vst [vmem:[#allocation3 + $0x28] sm:$0xf] %v224_v10 }
  0x1b   : > { %227 = vst [vmem:[#allocation3 + $0x2c] sm:$0xf] %v226_v11  ;;  %v228_v12 = vld [vmem:[%s1986_s1 + $0x60] sm:$0xf]  ;;  %v230_v13 = vld [vmem:[%s1986_s1 + $0x68] sm:$0xf] }
  0x1c   : > { %v232_v14 = vld [vmem:[%s1986_s1 + $0x70] sm:$0xf]  ;;  %229 = vst [vmem:[#allocation3 + $0x30] sm:$0xf] %v228_v12  ;;  %231 = vst [vmem:[#allocation3 + $0x34] sm:$0xf] %v230_v13 }
  0x1d   : > { %233 = vst [vmem:[#allocation3 + $0x38] sm:$0xf] %v232_v14  ;;  %v234_v15 = vld [vmem:[%s1986_s1 + $0x78] sm:$0xf]  ;;  %v236_v16 = vld [vmem:[%s1986_s1 + $0x80] sm:$0xf] }
  0x1e   : > { %v238_v17 = vld [vmem:[%s1986_s1 + $0x88] sm:$0xf]  ;;  %235 = vst [vmem:[#allocation3 + $0x3c] sm:$0xf] %v234_v15  ;;  %237 = vst [vmem:[#allocation3 + $0x40] sm:$0xf] %v236_v16 }
  0x1f   : > { %239 = vst [vmem:[#allocation3 + $0x44] sm:$0xf] %v238_v17  ;;  %v240_v18 = vld [vmem:[%s1986_s1 + $0x90] sm:$0xf]  ;;  %v242_v19 = vld [vmem:[%s1986_s1 + $0x98] sm:$0xf] }
  0x20   : > { %v244_v20 = vld [vmem:[%s1986_s1 + $0xa0] sm:$0xf]  ;;  %241 = vst [vmem:[#allocation3 + $0x48] sm:$0xf] %v240_v18  ;;  %243 = vst [vmem:[#allocation3 + $0x4c] sm:$0xf] %v242_v19 }
  0x21   : > { %245 = vst [vmem:[#allocation3 + $0x50] sm:$0xf] %v244_v20  ;;  %v246_v21 = vld [vmem:[%s1986_s1 + $0xa8] sm:$0xf]  ;;  %v248_v22 = vld [vmem:[%s1986_s1 + $0xb0] sm:$0xf] }
  0x22   : > { %v250_v23 = vld [vmem:[%s1986_s1 + $0xb8] sm:$0xf]  ;;  %247 = vst [vmem:[#allocation3 + $0x54] sm:$0xf] %v246_v21  ;;  %249 = vst [vmem:[#allocation3 + $0x58] sm:$0xf] %v248_v22 }
  0x23   : > { %251 = vst [vmem:[#allocation3 + $0x5c] sm:$0xf] %v250_v23  ;;  %v252_v24 = vld [vmem:[%s1986_s1 + $0xc0] sm:$0xf]  ;;  %v254_v25 = vld [vmem:[%s1986_s1 + $0xc8] sm:$0xf] }
  0x24   : > { %v256_v26 = vld [vmem:[%s1986_s1 + $0xd0] sm:$0xf]  ;;  %253 = vst [vmem:[#allocation3 + $0x60] sm:$0xf] %v252_v24  ;;  %255 = vst [vmem:[#allocation3 + $0x64] sm:$0xf] %v254_v25 }
  0x25   : > { %257 = vst [vmem:[#allocation3 + $0x68] sm:$0xf] %v256_v26  ;;  %v258_v27 = vld [vmem:[%s1986_s1 + $0xd8] sm:$0xf]  ;;  %v260_v28 = vld [vmem:[%s1986_s1 + $0xe0] sm:$0xf] }
  0x26   : > { %v262_v29 = vld [vmem:[%s1986_s1 + $0xe8] sm:$0xf]  ;;  %259 = vst [vmem:[#allocation3 + $0x6c] sm:$0xf] %v258_v27  ;;  %261 = vst [vmem:[#allocation3 + $0x70] sm:$0xf] %v260_v28 }
  0x27   : > { %263 = vst [vmem:[#allocation3 + $0x74] sm:$0xf] %v262_v29  ;;  %v264_v30 = vld [vmem:[%s1986_s1 + $0xf0] sm:$0xf]  ;;  %v266_v31 = vld [vmem:[%s1986_s1 + $0xf8] sm:$0xf] }
  0x28   : > { %265 = vst [vmem:[#allocation3 + $0x78] sm:$0xf] %v264_v30  ;;  %267 = vst [vmem:[#allocation3 + $0x7c] sm:$0xf] %v266_v31 }
  0x29 PF: > { %p1315_p9 = scmp.ge.s32.totalorder %s1660_s22, 2 }
  0x2b   : > { %358 = sbr.rel (%p1315_p9) target bundleno = 64 (0x40), region = 61 }
  0x32   : > { %376 = sbr.rel (!%p1726_p3) target bundleno = 64 (0x40), region = 69  ;;  %s378_s30 = sand.u32 (%p1726_p3), 1, %s1648_s19  }
  0x33   : > { %s1379_s6 = sshll.u32 (%p1726_p3), %s1656_s21, 7  ;;  %s1316_s7 = sshll.u32 (%p1726_p3), %s378_s30, 6 }
  0x34   : > { %s1847_s10 = scalar_lea.vmem (%p1726_p3), %s1987_s2, %s1379_s6  ;;  %s380_s26 = scalar_lea.vmem (%p1726_p3), [#allocation4], %s1316_s7 }
  0x35   : > { %v1319_v32 = vld [vmem:[%s1847_s10 + $0x4] sm:$0xf] (%p1726_p3)  ;;  %v1320_v33 = vld [vmem:[%s1847_s10 + $0xc] sm:$0xf] (%p1726_p3)  ;;  %v1321_v34 = vld [vmem:[%s1847_s10 + $0x14] sm:$0xf] (%p1726_p3) }
  0x36   : > { %402 = vst [vmem:[%s380_s26] sm:$0xf] (%p1726_p3), %v1319_v32  ;;  %404 = vst [vmem:[%s380_s26 + $0x4] sm:$0xf] (%p1726_p3), %v1320_v33  ;;  %v1322_v35 = vld [vmem:[%s1847_s10 + $0x1c] sm:$0xf] (%p1726_p3) }
  0x37   : > { %v1323_v36 = vld [vmem:[%s1847_s10 + $0x24] sm:$0xf] (%p1726_p3)  ;;  %406 = vst [vmem:[%s380_s26 + $0x8] sm:$0xf] (%p1726_p3), %v1321_v34  ;;  %408 = vst [vmem:[%s380_s26 + $0xc] sm:$0xf] (%p1726_p3), %v1322_v35 }
  0x38   : > { %410 = vst [vmem:[%s380_s26 + $0x10] sm:$0xf] (%p1726_p3), %v1323_v36  ;;  %v1324_v37 = vld [vmem:[%s1847_s10 + $0x2c] sm:$0xf] (%p1726_p3)  ;;  %v1325_v38 = vld [vmem:[%s1847_s10 + $0x34] sm:$0xf] (%p1726_p3) }
  0x39   : > { %v1326_v39 = vld [vmem:[%s1847_s10 + $0x3c] sm:$0xf]  ;;  %412 = vst [vmem:[%s380_s26 + $0x14] sm:$0xf] %v1324_v37  ;;  %414 = vst [vmem:[%s380_s26 + $0x18] sm:$0xf] %v1325_v38 }
  0x3a   : > { %416 = vst [vmem:[%s380_s26 + $0x1c] sm:$0xf] %v1326_v39  ;;  %v1327_v40 = vld [vmem:[%s1847_s10 + $0x44] sm:$0xf]  ;;  %v1328_v41 = vld [vmem:[%s1847_s10 + $0x4c] sm:$0xf] }
  0x3b   : > { %v1329_v42 = vld [vmem:[%s1847_s10 + $0x54] sm:$0xf]  ;;  %418 = vst [vmem:[%s380_s26 + $0x20] sm:$0xf] %v1327_v40  ;;  %420 = vst [vmem:[%s380_s26 + $0x24] sm:$0xf] %v1328_v41 }
  0x3c   : > { %422 = vst [vmem:[%s380_s26 + $0x28] sm:$0xf] %v1329_v42  ;;  %v1330_v43 = vld [vmem:[%s1847_s10 + $0x5c] sm:$0xf]  ;;  %v1331_v44 = vld [vmem:[%s1847_s10 + $0x64] sm:$0xf] }
  0x3d   : > { %v1332_v45 = vld [vmem:[%s1847_s10 + $0x6c] sm:$0xf]  ;;  %424 = vst [vmem:[%s380_s26 + $0x2c] sm:$0xf] %v1330_v43  ;;  %426 = vst [vmem:[%s380_s26 + $0x30] sm:$0xf] %v1331_v44 }
  0x3e   : > { %428 = vst [vmem:[%s380_s26 + $0x34] sm:$0xf] %v1332_v45  ;;  %v1333_v46 = vld [vmem:[%s1847_s10 + $0x74] sm:$0xf]  ;;  %v1334_v47 = vld [vmem:[%s1847_s10 + $0x7c] sm:$0xf] }
  0x3f   : > { %430 = vst [vmem:[%s380_s26 + $0x38] sm:$0xf] %v1333_v46  ;;  %432 = vst [vmem:[%s380_s26 + $0x3c] sm:$0xf] %v1334_v47 }
  0x40 PF: > { %499 = sbr.rel (%p1734_p7) target bundleno = 349 (0x15d), region = 114  ;;  %v1606_v48 = vld [vmem:[#allocation3 + $0x40] sm:$0xff] (!%p1734_p7)   ;;  %s1337_s11 = sshll.u32 (!%p1734_p7), %s1652_s20, 2  ;;  %v1608_v50 = vld [vmem:[#allocation3 + $0x48] sm:$0xff] (!%p1734_p7)   ;;  %v1610_v52 = vld [vmem:[#allocation3 + $0x50] sm:$0xff] (!%p1734_p7)   ;;  %v1662_v53 = vmov (!%p1734_p7), 0  }
  0x41   : > { %v1607_v49 = vld [vmem:[#allocation3] sm:$0xff] (!%p1734_p7)   ;;  %p549_p10 = scmp.lt.s32.totalorder (!%p1734_p7), %s1337_s11, 7  ;;  %1483 = vmatprep.subr.bf16.mxu0 (!%p1734_p7), %v1606_v48  ;;  %1547 = vmatprep.subr.bf16.mxu1 (!%p1734_p7), %v1606_v48  ;;  %v1609_v51 = vld [vmem:[#allocation3 + $0x8] sm:$0xff] (!%p1734_p7)   ;;  %s1340_s12 = sshll.u32 (!%p1734_p7), %s1652_s20, 4  ;;  %v1611_v54 = vld [vmem:[#allocation3 + $0x10] sm:$0xff] (!%p1734_p7)  }
  0x42   : > { %1484 = vmatpush3.bf16.msra.mxu0 (!%p1734_p7), %v1607_v49  ;;  %1555 = vmatpush3.bf16.msra.mxu1 (!%p1734_p7), %v1607_v49  ;;  %p561_p11 = scmp.lt.s32.totalorder (!%p1734_p7), %s1340_s12, 31  ;;  %v1612_v55 = vld [vmem:[#allocation3 + $0x58] sm:$0xff] (!%p1734_p7)   ;;  %v1614_v57 = vld [vmem:[#allocation3 + $0x60] sm:$0xff] (!%p1734_p7)   ;;  %v1616_v59 = vld [vmem:[#allocation3 + $0x68] sm:$0xff] (!%p1734_p7)   ;;  %s505_s25 = sand.u32 (!%p1734_p7), 1, %s1644_s18  }
  0x43   : > { %1485 = vmatprep.subr.bf16.mxu0 (!%p1734_p7), %v1608_v50  ;;  %1548 = vmatprep.subr.bf16.mxu1 (!%p1734_p7), %v1608_v50  ;;  %v1613_v56 = vld [vmem:[#allocation3 + $0x18] sm:$0xff] (!%p1734_p7)   ;;  %v1615_v58 = vld [vmem:[#allocation3 + $0x20] sm:$0xff] (!%p1734_p7)   ;;  %v1617_v0 = vld [vmem:[#allocation3 + $0x28] sm:$0xff] (!%p1734_p7)   ;;  %s1336_s27 = sshll.u32 (!%p1734_p7), %s505_s25, 6 }
  0x44   : > { %1605 = vset.pattern.permute.xlu1 (!%p1734_p7), %v1662_v53  ;;  %1604 = vset.pattern.permute.xlu0 (!%p1734_p7), %v1662_v53  ;;  %v1618_v3 = vld [vmem:[#allocation3 + $0x70] sm:$0xff] (!%p1734_p7)   ;;  %v1620_v7 = vld [vmem:[#allocation3 + $0x78] sm:$0xff] (!%p1734_p7)   ;;  %s1919_s30 = scalar_lea.vmem (!%p1734_p7), [#allocation4], %s1336_s27 }
  0x45   : > { %v1619_v4 = vld [vmem:[#allocation3 + $0x30] sm:$0xff] (!%p1734_p7)   ;;  %v1621_v8 = vld [vmem:[#allocation3 + $0x38] sm:$0xff] (!%p1734_p7)  }
  0x46   : > { %1486 = vmatpush3.bf16.msra.mxu0 (!%p1734_p7), %v1609_v51  ;;  %1556 = vmatpush3.bf16.msra.mxu1 (!%p1734_p7), %v1609_v51  ;;  %v1398_v50 = vld [vmem:[%s1919_s30] sm:$0xff] (!%p1734_p7)  }
  0x47   : > { %s2000_s11 = smov (!%p549_p10, %s1337_s11), 7  ;;  %1487 = vmatprep.subr.bf16.mxu0 %v1610_v52  ;;  %1549 = vmatprep.subr.bf16.mxu1 %v1610_v52  ;;  %s2002_s12 = smov (!%p561_p11, %s1340_s12), 31  ;;  %v1472_v51 = vld [vmem:[%s1919_s30 + $0x20] sm:$0xff]  }
  0x48   : > { %s1380_s28 = sshll.u32 %s2000_s11, 4  ;;  %s1341_s15 = sshll.u32 %s2002_s12, 3 }
  0x49   : > { %s1874_s14 = scalar_lea.vmem %s1985_s0, %s1380_s28  ;;  %s1882_s23 = scalar_lea.vmem %s1988_s3, %s1341_s15 }
  0x4a   : > { %1488 = vmatpush3.bf16.msra.mxu0 %v1611_v54  ;;  %1557 = vmatpush3.bf16.msra.mxu1 %v1611_v54  ;;  %v594_v60 = vld [vmem:[%s1874_s14 + $0x8] sm:$0xff]  ;;  %v916_v1 = vld [vmem:[%s1882_s23 + $0x10] sm:$0xff]  ;;  %v914_v2 = vld [vmem:[%s1882_s23] sm:$0xff]  ;;  %s1343_s7 = sshll.u32 %s2002_s12, 2 }
  0x4b   : > { %1489 = vmatprep.subr.bf16.mxu0 %v1612_v55  ;;  %1550 = vmatprep.subr.bf16.mxu1 %v1612_v55  ;;  %v598_v61 = vld [vmem:[%s1874_s14 + $0x28] sm:$0xff]  ;;  %v602_v62 = vunpack.c.l.s8.bf16 %v594_v60  ;;  %v917_v5 = vld [vmem:[%s1882_s23 + $0x18] sm:$0xff]  ;;  %v593_v9 = vld [vmem:[%s1874_s14] sm:$0xff]  ;;  %v604_v15 = vunpack.c.h.s8.bf16 %v594_v60  ;;  %s1938_s10 = scalar_lea.vmem %s1990_s5, %s1343_s7 }
  0x4c   : > { %v610_v63 = vunpack.c.l.s8.bf16 %v598_v61  ;;  %942 = vperm.xlu1 %1605, %v916_v1   ;;  %932 = vperm.xlu0 %1604, %v914_v2   ;;  %v915_v6 = vld [vmem:[%s1882_s23 + $0x8] sm:$0xff]  ;;  %v597_v10 = vld [vmem:[%s1874_s14 + $0x20] sm:$0xff]  ;;  %v601_v13 = vunpack.c.l.s8.bf16 %v593_v9  ;;  %v612_v16 = vunpack.c.h.s8.bf16 %v598_v61  ;;  %v921_v17 = vld [vmem:[%s1882_s23 + $0x38] sm:$0xff]  ;;  %v603_v23 = vunpack.c.h.s8.bf16 %v593_v9 }
  0x4d   : > { %798 = vmatprep.mubr.bf16.mxu0 %v602_v62  ;;  %v919_v11 = vld [vmem:[%s1882_s23 + $0x28] sm:$0xff]  ;;  %v918_v12 = vld [vmem:[%s1882_s23 + $0x20] sm:$0xff]  ;;  %v609_v14 = vunpack.c.l.s8.bf16 %v597_v10  ;;  %v920_v18 = vld [vmem:[%s1882_s23 + $0x30] sm:$0xff]  ;;  %v611_v24 = vunpack.c.h.s8.bf16 %v597_v10  ;;  %v1416_v1 = vunpack.c.h.bf16 %v1472_v51 }
  0x4e   : > { %1490 = vmatpush3.bf16.msra.mxu0 %v1613_v56  ;;  %1558 = vmatpush3.bf16.msra.mxu1 %v1613_v56  ;;  %v596_v19 = vld [vmem:[%s1874_s14 + $0x18] sm:$0xff]  ;;  %v923_v21 = vld [vmem:[%s1882_s23 + $0x48] sm:$0xff]  ;;  %v922_v22 = vld [vmem:[%s1882_s23 + $0x40] sm:$0xff] }
  0x4f   : > { %1491 = vmatprep.subr.bf16.mxu0 %v1614_v57  ;;  %1551 = vmatprep.subr.bf16.mxu1 %v1614_v57  ;;  %v600_v20 = vld [vmem:[%s1874_s14 + $0x38] sm:$0xff]  ;;  %v606_v25 = vunpack.c.l.s8.bf16 %v596_v19  ;;  %v924_v28 = vld [vmem:[%s1882_s23 + $0x50] sm:$0xff]  ;;  %v927_v31 = vld [vmem:[%s1882_s23 + $0x68] sm:$0xff]  ;;  %v608_v35 = vunpack.c.h.s8.bf16 %v596_v19  ;;  %v1399_v57 = vunpack.c.l.bf16 %v1398_v50 }
  0x50   : > { %830 = vmatprep.mubr.bf16.mxu1 %v610_v63  ;;  %947 = vperm.xlu1 %1605, %v917_v5   ;;  %v614_v26 = vunpack.c.l.s8.bf16 %v600_v20  ;;  %v925_v27 = vld [vmem:[%s1882_s23 + $0x58] sm:$0xff]  ;;  %v595_v29 = vld [vmem:[%s1874_s14 + $0x10] sm:$0xff]  ;;  %v926_v32 = vld [vmem:[%s1882_s23 + $0x60] sm:$0xff]  ;;  %v616_v36 = vunpack.c.h.s8.bf16 %v600_v20  ;;  %v1400_v63 = vunpack.c.h.bf16 %v1398_v50 }
  0x51   : > { %937 = vperm.xlu0 %1604, %v915_v6   ;;  %v599_v30 = vld [vmem:[%s1874_s14 + $0x30] sm:$0xff]  ;;  %v605_v33 = vunpack.c.l.s8.bf16 %v595_v29  ;;  %v929_v37 = vld [vmem:[%s1882_s23 + $0x78] sm:$0xff]  ;;  %v607_v39 = vunpack.c.h.s8.bf16 %v595_v29 }
  0x52   : > { %1492 = vmatpush3.bf16.msra.mxu0 %v1615_v58  ;;  %1559 = vmatpush3.bf16.msra.mxu1 %v1615_v58  ;;  %v613_v34 = vunpack.c.l.s8.bf16 %v599_v30  ;;  %v928_v38 = vld [vmem:[%s1882_s23 + $0x70] sm:$0xff]  ;;  %v615_v40 = vunpack.c.h.s8.bf16 %v599_v30 }
  0x53   : > { %1493 = vmatprep.subr.bf16.mxu0 %v1616_v59  ;;  %1552 = vmatprep.subr.bf16.mxu1 %v1616_v59  ;;  %v1415_v59 = vunpack.c.l.bf16 %v1472_v51 }
  0x54   : > { %957 = vperm.xlu1 %1605, %v919_v11  }
  0x55   : > { %952 = vperm.xlu0 %1604, %v918_v12   ;;  %v1469_v12 = vld [vmem:[%s1919_s30 + $0x8] sm:$0xff]  }
  0x56   : > { %1494 = vmatpush3.bf16.msra.mxu0 %v1617_v0  ;;  %1560 = vmatpush3.bf16.msra.mxu1 %v1617_v0  ;;  %v1404_v29 = vunpack.c.h.bf16 %v1469_v12 }
  0x57   : > { %1495 = vmatprep.subr.bf16.mxu0 %v1618_v3  ;;  %1553 = vmatprep.subr.bf16.mxu1 %v1618_v3 }
  0x58   : > { %967 = vperm.xlu1 %1605, %v921_v17  }
  0x59   : > { %962 = vperm.xlu0 %1604, %v920_v18  }
  0x5a   : > { %1496 = vmatpush3.bf16.msra.mxu0 %v1619_v4  ;;  %1561 = vmatpush3.bf16.msra.mxu1 %v1619_v4 }
  0x5b   : > { %1497 = vmatprep.subr.bf16.mxu0 %v1620_v7  ;;  %1554 = vmatprep.subr.bf16.mxu1 %v1620_v7  ;;  %v1926_v7 = vld [vmem:[%s1989_s4] ss:$0 sm:$0xff] }
  0x5c   : > { %977 = vperm.xlu1 %1605, %v923_v21  }
  0x5d   : > { %972 = vperm.xlu0 %1604, %v922_v22   ;;  %v1403_v22 = vunpack.c.l.bf16 %v1469_v12 }
  0x5e   : > { %1498 = vmatpush3.bf16.msra.mxu0 %v1621_v8  ;;  %1562 = vmatpush3.bf16.msra.mxu1 %v1621_v8 }
  0x60   : > { %987 = vperm.xlu1 %1605, %v925_v27  }
  0x61   : > { %799 = vmatmul.mubr.bf16.vlgmr.msra.gmra.mrb[0].mxu0 %v601_v13  ;;  %831 = vmatmul.mubr.bf16.vlgmr.msra.gmra.mrb[0].mxu1 %v609_v14  ;;  %v1473_v13 = vld [vmem:[%s1919_s30 + $0x28] sm:$0xff]  }
  0x62   : > { %806 = vmatprep.mubr.bf16.mxu0 %v604_v15  ;;  %838 = vmatprep.mubr.bf16.mxu1 %v612_v16  ;;  %v1420_v30 = vunpack.c.h.bf16 %v1473_v13 }
  0x63   : > { %982 = vperm.xlu0 %1604, %v924_v28  }
  0x64   : > { %997 = vperm.xlu1 %1605, %v927_v31  }
  0x67   : > { %992 = vperm.xlu0 %1604, %v926_v32  }
  0x68   : > { %1007 = vperm.xlu1 %1605, %v929_v37  }
  0x69   : > { %807 = vmatmul.mubr.bf16.gmra.mrb[4].mxu0 %v603_v23  ;;  %839 = vmatmul.mubr.bf16.gmra.mrb[4].mxu1 %v611_v24  ;;  %v1419_v24 = vunpack.c.l.bf16 %v1473_v13 }
  0x6a   : > { %814 = vmatprep.mubr.bf16.mxu0 %v606_v25  ;;  %846 = vmatprep.mubr.bf16.mxu1 %v614_v26 }
  0x6b   : > { %1002 = vperm.xlu0 %1604, %v928_v38  }
  0x71   : > { %815 = vmatmul.mubr.bf16.gmra.mrb[8].mxu0 %v605_v33  ;;  %847 = vmatmul.mubr.bf16.gmra.mrb[8].mxu1 %v613_v34 }
  0x72   : > { %822 = vmatprep.mubr.bf16.mxu0 %v608_v35  ;;  %854 = vmatprep.mubr.bf16.mxu1 %v616_v36 }
  0x79   : > { %823 = vmatmul.mubr.bf16.gmra.mrb[12].mxu0 %v607_v39  ;;  %855 = vmatmul.mubr.bf16.gmra.mrb[12].mxu1 %v615_v40 }
  0xcb   : > { %v933_v41 = vpop.permute.xlu0 %932  ;;  %v1906_v42 = vpop.permute.xlu1 %942 }
  0xcf   : > { %v1908_v44 = vpop.permute.xlu1 %947 }
  0xd0   : > { %v938_v43 = vpop.permute.xlu0 %937 }
  0xd3   : > { %v1913_v46 = vpop.permute.xlu1 %957 }
  0xd4   : > { %v1910_v45 = vpop.permute.xlu0 %952 }
  0xd7   : > { %v1917_v48 = vpop.permute.xlu1 %967 }
  0xd8   : > { %v1915_v47 = vpop.permute.xlu0 %962 }
  0xdb   : > { %v978_v6 = vpop.permute.xlu1 %977 }
  0xdc   : > { %v973_v49 = vpop.permute.xlu0 %972 }
  0xe2   : > { %v983_v14 = vpop.permute.xlu0 %982 }
 0x134   : > { %v1499_v52 = vpop.f32.mrb[0].mxu0  ;;  %v1523_v53 = vpop.f32.mrb[0].mxu1 }
 0x135   : > { %v1500_v54 = vpop.f32.mrb[1].mxu0  ;;  %v1524_v55 = vpop.f32.mrb[1].mxu1 }
 0x136   : > { %v1501_v56 = vadd.f32 %v1500_v54, %v1499_v52  ;;  %v1525_v58 = vadd.f32 %v1524_v55, %v1523_v53  ;;  %v1502_v60 = vpop.f32.mrb[2].mxu0  ;;  %v1526_v61 = vpop.f32.mrb[2].mxu1  ;;  %v1470_v54 = vld [vmem:[%s1919_s30 + $0x10] sm:$0xff]  }
 0x137   : > { %v1503_v62 = vpop.f32.mrb[3].mxu0  ;;  %v1527_v0 = vpop.f32.mrb[3].mxu1  ;;  %v1474_v55 = vld [vmem:[%s1919_s30 + $0x30] sm:$0xff]  }
 0x138   : > { %v1010_v2 = vmul.f32 %v1501_v56, %v933_v41  ;;  %v1018_v3 = vmul.f32 %v1525_v58, %v973_v49  ;;  %v1504_v4 = vadd.f32 %v1503_v62, %v1502_v60  ;;  %v1528_v5 = vadd.f32 %v1527_v0, %v1526_v61  ;;  %v988_v41 = vpop.permute.xlu1 %987  ;;  %v993_v56 = vpop.permute.xlu0 %992 }
 0x13a   : > { %v1058_v8 = vadd.f32 %v1399_v57, %v1010_v2  ;;  %v1066_v9 = vadd.f32 %v1415_v59, %v1018_v3  ;;  %v1011_v10 = vmul.f32 %v1504_v4, %v938_v43  ;;  %v1019_v11 = vmul.f32 %v1528_v5, %v978_v6 }
 0x13c   : > { %v1081_v15 = vadd.f32 %v1926_v7, %v1058_v8  ;;  %v1089_v16 = vadd.f32 %v1926_v7, %v1066_v9  ;;  %v1059_v17 = vadd.f32 %v1400_v63, %v1011_v10  ;;  %v1067_v18 = vadd.f32 %v1416_v1, %v1019_v11  ;;  %v1505_v19 = vpop.f32.mrb[4].mxu0  ;;  %v1529_v20 = vpop.f32.mrb[4].mxu1 }
 0x13d   : > { %v1506_v21 = vpop.f32.mrb[5].mxu0  ;;  %v1530_v23 = vpop.f32.mrb[5].mxu1  ;;  %v1407_v1 = vunpack.c.l.bf16 %v1470_v54 }
 0x13e   : > { %v1082_v25 = vadd.f32 %v1926_v7, %v1059_v17  ;;  %v1090_v26 = vadd.f32 %v1926_v7, %v1067_v18  ;;  %v1508_v27 = vpop.f32.mrb[6].mxu0  ;;  %v1532_v28 = vpop.f32.mrb[6].mxu1  ;;  %v1097_v31 = vmax.f32 %v1081_v15, 0.0  ;;  %v1105_v32 = vmax.f32 %v1089_v16, 0.0 }
 0x13f   : > { %v1507_v33 = vadd.f32 %v1506_v21, %v1505_v19  ;;  %v1531_v34 = vadd.f32 %v1530_v23, %v1529_v20  ;;  %v1509_v35 = vpop.f32.mrb[7].mxu0  ;;  %v1533_v36 = vpop.f32.mrb[7].mxu1  ;;  %v1408_v19 = vunpack.c.h.bf16 %v1470_v54  ;;  %v1424_v21 = vunpack.c.h.bf16 %v1474_v55 }
 0x140   : > { %v1098_v37 = vmax.f32 %v1082_v25, 0.0  ;;  %v1106_v38 = vmax.f32 %v1090_v26, 0.0  ;;  %v1510_v39 = vadd.f32 %v1509_v35, %v1508_v27  ;;  %v1534_v40 = vadd.f32 %v1533_v36, %v1532_v28  ;;  %v1003_v27 = vpop.permute.xlu0 %1002 }
 0x141   : > { %v1012_v43 = vmul.f32 %v1507_v33, %v1906_v42  ;;  %v1020_v49 = vmul.f32 %v1531_v34, %v983_v14 }
 0x142   : > { %v1432_v50 = vpack.c.bf16 %v1098_v37, %v1097_v31  ;;  %v1452_v51 = vpack.c.bf16 %v1106_v38, %v1105_v32  ;;  %v1013_v52 = vmul.f32 %v1510_v39, %v1908_v44  ;;  %v1021_v53 = vmul.f32 %v1534_v40, %v988_v41  ;;  %v1475_v31 = vld [vmem:[%s1919_s30 + $0x38] sm:$0xff]  }
 0x143   : > { %v1060_v57 = vadd.f32 %v1403_v22, %v1012_v43  ;;  %v1068_v58 = vadd.f32 %v1419_v24, %v1020_v49  ;;  %v1423_v44 = vunpack.c.l.bf16 %v1474_v55  ;;  %v998_v22 = vpop.permute.xlu1 %997  ;;  %v1427_v43 = vunpack.c.l.bf16 %v1475_v31 }
 0x144   : > { %1433 = vst [vmem:[%s1938_s10] sm:$0xff] %v1432_v50   ;;  %1479 = vst [vmem:[%s1938_s10 + $0x20] sm:$0xff] %v1452_v51   ;;  %v1061_v59 = vadd.f32 %v1404_v29, %v1013_v52  ;;  %v1069_v60 = vadd.f32 %v1420_v30, %v1021_v53  ;;  %v1511_v61 = vpop.f32.mrb[8].mxu0  ;;  %v1535_v62 = vpop.f32.mrb[8].mxu1  ;;  %v1471_v30 = vld [vmem:[%s1919_s30 + $0x18] sm:$0xff]   ;;  %v1428_v55 = vunpack.c.h.bf16 %v1475_v31 }
 0x145   : > { %v1083_v63 = vadd.f32 %v1926_v7, %v1060_v57  ;;  %v1091_v42 = vadd.f32 %v1926_v7, %v1068_v58  ;;  %v1512_v0 = vpop.f32.mrb[9].mxu0  ;;  %v1536_v2 = vpop.f32.mrb[9].mxu1  ;;  %v1411_v40 = vunpack.c.l.bf16 %v1471_v30  ;;  %v1412_v53 = vunpack.c.h.bf16 %v1471_v30 }
 0x146   : > { %v1084_v3 = vadd.f32 %v1926_v7, %v1061_v59  ;;  %v1092_v4 = vadd.f32 %v1926_v7, %v1069_v60  ;;  %v1513_v5 = vadd.f32 %v1512_v0, %v1511_v61  ;;  %v1537_v6 = vadd.f32 %v1536_v2, %v1535_v62  ;;  %v1514_v8 = vpop.f32.mrb[10].mxu0  ;;  %v1538_v9 = vpop.f32.mrb[10].mxu1 }
 0x147   : > { %v1099_v10 = vmax.f32 %v1083_v63, 0.0  ;;  %v1107_v11 = vmax.f32 %v1091_v42, 0.0  ;;  %v1515_v12 = vpop.f32.mrb[11].mxu0  ;;  %v1539_v13 = vpop.f32.mrb[11].mxu1 }
 0x148   : > { %v1100_v14 = vmax.f32 %v1084_v3, 0.0  ;;  %v1108_v15 = vmax.f32 %v1092_v4, 0.0  ;;  %v1014_v16 = vmul.f32 %v1513_v5, %v1910_v45  ;;  %v1022_v17 = vmul.f32 %v1537_v6, %v993_v56  ;;  %v1008_v60 = vpop.permute.xlu1 %1007 }
 0x149   : > { %v1516_v18 = vadd.f32 %v1515_v12, %v1514_v8  ;;  %v1540_v20 = vadd.f32 %v1539_v13, %v1538_v9 }
 0x14a   : > { %v1437_v23 = vpack.c.bf16 %v1100_v14, %v1099_v10  ;;  %v1457_v24 = vpack.c.bf16 %v1108_v15, %v1107_v11  ;;  %v1062_v25 = vadd.f32 %v1407_v1, %v1014_v16  ;;  %v1070_v26 = vadd.f32 %v1423_v44, %v1022_v17 }
 0x14b   : > { %v1015_v28 = vmul.f32 %v1516_v18, %v1913_v46  ;;  %v1023_v29 = vmul.f32 %v1540_v20, %v998_v22 }
 0x14c   : > { %1476 = vst [vmem:[%s1938_s10 + $0x8] sm:$0xff] %v1437_v23   ;;  %1480 = vst [vmem:[%s1938_s10 + $0x28] sm:$0xff] %v1457_v24   ;;  %v1517_v45 = vpop.f32.mrb[12].mxu0  ;;  %v1541_v32 = vpop.f32.mrb[12].mxu1  ;;  %v1085_v33 = vadd.f32 %v1926_v7, %v1062_v25  ;;  %v1093_v34 = vadd.f32 %v1926_v7, %v1070_v26 }
 0x14d   : > { %v1063_v35 = vadd.f32 %v1408_v19, %v1015_v28  ;;  %v1071_v36 = vadd.f32 %v1424_v21, %v1023_v29  ;;  %v1518_v37 = vpop.f32.mrb[13].mxu0  ;;  %v1542_v38 = vpop.f32.mrb[13].mxu1 }
 0x14e   : > { %v1519_v39 = vadd.f32 %v1518_v37, %v1517_v45  ;;  %v1543_v41 = vadd.f32 %v1542_v38, %v1541_v32  ;;  %v1520_v46 = vpop.f32.mrb[14].mxu0  ;;  %v1544_v49 = vpop.f32.mrb[14].mxu1  ;;  %v1101_v61 = vmax.f32 %v1085_v33, 0.0  ;;  %v1109_v62 = vmax.f32 %v1093_v34, 0.0 }
 0x14f   : > { %v1086_v50 = vadd.f32 %v1926_v7, %v1063_v35  ;;  %v1094_v51 = vadd.f32 %v1926_v7, %v1071_v36  ;;  %v1521_v52 = vpop.f32.mrb[15].mxu0  ;;  %v1545_v54 = vpop.f32.mrb[15].mxu1 }
 0x150   : > { %v1016_v56 = vmul.f32 %v1519_v39, %v1915_v47  ;;  %v1024_v57 = vmul.f32 %v1543_v41, %v1003_v27  ;;  %v1522_v58 = vadd.f32 %v1521_v52, %v1520_v46  ;;  %v1546_v59 = vadd.f32 %v1545_v54, %v1544_v49 }
 0x151   : > { %v1102_v63 = vmax.f32 %v1086_v50, 0.0  ;;  %v1110_v42 = vmax.f32 %v1094_v51, 0.0 }
 0x152   : > { %v1064_v0 = vadd.f32 %v1411_v40, %v1016_v56  ;;  %v1072_v1 = vadd.f32 %v1427_v43, %v1024_v57  ;;  %v1017_v2 = vmul.f32 %v1522_v58, %v1917_v48  ;;  %v1025_v44 = vmul.f32 %v1546_v59, %v1008_v60 }
 0x153   : > { %v1442_v3 = vpack.c.bf16 %v1102_v63, %v1101_v61  ;;  %v1462_v4 = vpack.c.bf16 %v1110_v42, %v1109_v62 }
 0x154   : > { %v1087_v47 = vadd.f32 %v1926_v7, %v1064_v0  ;;  %v1095_v5 = vadd.f32 %v1926_v7, %v1072_v1  ;;  %v1065_v6 = vadd.f32 %v1412_v53, %v1017_v2  ;;  %v1073_v8 = vadd.f32 %v1428_v55, %v1025_v44 }
 0x155   : > { %1477 = vst [vmem:[%s1938_s10 + $0x10] sm:$0xff] %v1442_v3   ;;  %1481 = vst [vmem:[%s1938_s10 + $0x30] sm:$0xff] %v1462_v4  }
 0x156   : > { %v1088_v9 = vadd.f32 %v1926_v7, %v1065_v6  ;;  %v1096_v10 = vadd.f32 %v1926_v7, %v1073_v8  ;;  %v1103_v11 = vmax.f32 %v1087_v47, 0.0  ;;  %v1111_v12 = vmax.f32 %v1095_v5, 0.0 }
 0x158   : > { %v1104_v48 = vmax.f32 %v1088_v9, 0.0  ;;  %v1112_v13 = vmax.f32 %v1096_v10, 0.0 }
 0x15a   : > { %v1447_v14 = vpack.c.bf16 %v1104_v48, %v1103_v11  ;;  %v1467_v15 = vpack.c.bf16 %v1112_v13, %v1111_v12 }
 0x15c   : > { %1478 = vst [vmem:[%s1938_s10 + $0x18] sm:$0xff] %v1447_v14   ;;  %1482 = vst [vmem:[%s1938_s10 + $0x38] sm:$0xff] %v1467_v15  }
 0x15d PF: > { %s15_s22 = sadd.s32 1, %s1660_s22   ;;  %s1993_s18 = smov %s1648_s19 }
 0x15e   : > { %p12_p12 = scmp.ge.s32.totalorder %s15_s22, 4   ;;  %s1994_s19 = smov %s1739_s29 }
 0x15f   : > { %s1995_s20 = smov %s1656_s21  ;;  %s1996_s21 = smov %s1998_s24 }
 0x160   :  { %14 = sbr.rel (!%p12_p12) target bundleno = 3 (0x3), region = 176 }

// kernel: graphsage_forward.7
= control target key start
LH: loop header
LB: loop body
LE: loop exit
PB: predicated region body
PF: predicated region fallthrough
CT: control target
= control target key end

     0   :  { %s1534_s18 = smov 0   ;;  %s1536_s19 = smov 0   ;;  %s1837_s0 = inlined_call_operand.vmem [shape: s8[256,256], index: 0, kind: input, shape index: {}]   ;;  %s1838_s1 = inlined_call_operand.vmem [shape: bf16[256,256], index: 1, kind: input, shape index: {}, may-alias: {1,2}]   ;;  %s1839_s2 = inlined_call_operand.vmem [shape: bf16[256,256], index: 2, kind: input, shape index: {}, may-alias: {1,2}]   ;;  %s1840_s3 = inlined_call_operand.vmem [shape: f32[256,1], index: 3, kind: input, shape index: {}]   ;;  %s1841_s4 = inlined_call_operand.vmem [shape: f32[1,128], index: 4, kind: input, shape index: {}]   ;;  %s1842_s5 = inlined_call_operand.vmem [shape: f32[256,128], index: 5, kind: output, shape index: {}]  }
   0x1   :  { %s1538_s20 = smov 0   ;;  %s1540_s21 = smov 0  }
   0x2   :  { %s1542_s22 = smov 0  }
   0x3 LB: > { %s1231_s23 = sadd.s32 4294967295, %s1501_s22   ;;  %s27_s24 = sadd.s32 1, %s1497_s21  ;;  %s1501_s22 = sphi %s1542_s22, %s15_s22   ;;  %s1497_s21 = sphi %s1540_s21, %s1848_s21   ;;  %s1493_s20 = sphi %s1538_s20, %s1847_s20   ;;  %s1489_s19 = sphi %s1536_s19, %s1846_s19   ;;  %s1485_s18 = sphi %s1534_s18, %s1845_s18  }
   0x4   : > { %p29_p0 = scmp.ge.s32.totalorder %s27_s24, 2  ;;  %s83_s25 = sadd.s32 1, %s1489_s19 }
   0x5   : > { %p90_p1 = scmp.ne.s32.totalorder %s1489_s19, %s1485_s18  ;;  %p91_p2 = scmp.eq.s32.totalorder %s1501_s22, 0 }
   0x6   : > { %s1850_s24 = smov (%p29_p0, %s27_s24), 0  ;;  %p1233_p4 = scmp.ge.s32.totalorder %s1501_s22, 1 }
   0x7   : > { %p1567_p3 = por %p91_p2, %p90_p1  ;;  %s80_s27 = ssub.s32 %s1497_s21, %s1850_s24 }
   0x8   : > { %p180_p5 = scmp.lt.s32.totalorder %s1501_s22, 3  ;;  %p81_p6 = scmp.eq.s32.totalorder %s80_s27, 0 }
   0xa   : > { %p1575_p7 = pnand %p1233_p4, %p180_p5 }
   0xb   : > { %s1580_s29 = scalar_select %p81_p6, %s1489_s19, %s83_s25  }
   0xc   : > { %184 = sbr.rel (%p1575_p7) target bundleno = 41 (0x29), region = 12  ;;  %p1234_p8 = scmp.ne.s32.totalorder (!%p1575_p7), %s1231_s23, 0 }
  0x13   : > { %188 = sbr.rel (%p1234_p8) target bundleno = 41 (0x29), region = 16  ;;  %v204_v0 = vld [vmem:[%s1838_s1] sm:$0xf] (!%p1234_p8)  ;;  %v206_v1 = vld [vmem:[%s1838_s1 + $0x8] sm:$0xf] (!%p1234_p8) }
  0x14   : > { %v208_v2 = vld [vmem:[%s1838_s1 + $0x10] sm:$0xf] (!%p1234_p8)  ;;  %205 = vst [vmem:[#allocation3] sm:$0xf] (!%p1234_p8), %v204_v0  ;;  %207 = vst [vmem:[#allocation3 + $0x4] sm:$0xf] (!%p1234_p8), %v206_v1 }
  0x15   : > { %209 = vst [vmem:[#allocation3 + $0x8] sm:$0xf] (!%p1234_p8), %v208_v2  ;;  %v210_v3 = vld [vmem:[%s1838_s1 + $0x18] sm:$0xf] (!%p1234_p8)  ;;  %v212_v4 = vld [vmem:[%s1838_s1 + $0x20] sm:$0xf] (!%p1234_p8) }
  0x16   : > { %v214_v5 = vld [vmem:[%s1838_s1 + $0x28] sm:$0xf] (!%p1234_p8)  ;;  %211 = vst [vmem:[#allocation3 + $0xc] sm:$0xf] (!%p1234_p8), %v210_v3  ;;  %213 = vst [vmem:[#allocation3 + $0x10] sm:$0xf] (!%p1234_p8), %v212_v4 }
  0x17   : > { %215 = vst [vmem:[#allocation3 + $0x14] sm:$0xf] (!%p1234_p8), %v214_v5  ;;  %v216_v6 = vld [vmem:[%s1838_s1 + $0x30] sm:$0xf] (!%p1234_p8)  ;;  %v218_v7 = vld [vmem:[%s1838_s1 + $0x38] sm:$0xf] (!%p1234_p8) }
  0x18   : > { %v220_v8 = vld [vmem:[%s1838_s1 + $0x40] sm:$0xf] (!%p1234_p8)  ;;  %217 = vst [vmem:[#allocation3 + $0x18] sm:$0xf] (!%p1234_p8), %v216_v6  ;;  %219 = vst [vmem:[#allocation3 + $0x1c] sm:$0xf] (!%p1234_p8), %v218_v7 }
  0x19   : > { %221 = vst [vmem:[#allocation3 + $0x20] sm:$0xf] (!%p1234_p8), %v220_v8  ;;  %v222_v9 = vld [vmem:[%s1838_s1 + $0x48] sm:$0xf] (!%p1234_p8)  ;;  %v224_v10 = vld [vmem:[%s1838_s1 + $0x50] sm:$0xf] (!%p1234_p8) }
  0x1a   : > { %v226_v11 = vld [vmem:[%s1838_s1 + $0x58] sm:$0xf]  ;;  %223 = vst [vmem:[#allocation3 + $0x24] sm:$0xf] %v222_v9  ;;  %225 = vst [vmem:[#allocation3 + $0x28] sm:$0xf] %v224_v10 }
  0x1b   : > { %227 = vst [vmem:[#allocation3 + $0x2c] sm:$0xf] %v226_v11  ;;  %v228_v12 = vld [vmem:[%s1838_s1 + $0x60] sm:$0xf]  ;;  %v230_v13 = vld [vmem:[%s1838_s1 + $0x68] sm:$0xf] }
  0x1c   : > { %v232_v14 = vld [vmem:[%s1838_s1 + $0x70] sm:$0xf]  ;;  %229 = vst [vmem:[#allocation3 + $0x30] sm:$0xf] %v228_v12  ;;  %231 = vst [vmem:[#allocation3 + $0x34] sm:$0xf] %v230_v13 }
  0x1d   : > { %233 = vst [vmem:[#allocation3 + $0x38] sm:$0xf] %v232_v14  ;;  %v234_v15 = vld [vmem:[%s1838_s1 + $0x78] sm:$0xf]  ;;  %v236_v16 = vld [vmem:[%s1838_s1 + $0x80] sm:$0xf] }
  0x1e   : > { %v238_v17 = vld [vmem:[%s1838_s1 + $0x88] sm:$0xf]  ;;  %235 = vst [vmem:[#allocation3 + $0x3c] sm:$0xf] %v234_v15  ;;  %237 = vst [vmem:[#allocation3 + $0x40] sm:$0xf] %v236_v16 }
  0x1f   : > { %239 = vst [vmem:[#allocation3 + $0x44] sm:$0xf] %v238_v17  ;;  %v240_v18 = vld [vmem:[%s1838_s1 + $0x90] sm:$0xf]  ;;  %v242_v19 = vld [vmem:[%s1838_s1 + $0x98] sm:$0xf] }
  0x20   : > { %v244_v20 = vld [vmem:[%s1838_s1 + $0xa0] sm:$0xf]  ;;  %241 = vst [vmem:[#allocation3 + $0x48] sm:$0xf] %v240_v18  ;;  %243 = vst [vmem:[#allocation3 + $0x4c] sm:$0xf] %v242_v19 }
  0x21   : > { %245 = vst [vmem:[#allocation3 + $0x50] sm:$0xf] %v244_v20  ;;  %v246_v21 = vld [vmem:[%s1838_s1 + $0xa8] sm:$0xf]  ;;  %v248_v22 = vld [vmem:[%s1838_s1 + $0xb0] sm:$0xf] }
  0x22   : > { %v250_v23 = vld [vmem:[%s1838_s1 + $0xb8] sm:$0xf]  ;;  %247 = vst [vmem:[#allocation3 + $0x54] sm:$0xf] %v246_v21  ;;  %249 = vst [vmem:[#allocation3 + $0x58] sm:$0xf] %v248_v22 }
  0x23   : > { %251 = vst [vmem:[#allocation3 + $0x5c] sm:$0xf] %v250_v23  ;;  %v252_v24 = vld [vmem:[%s1838_s1 + $0xc0] sm:$0xf]  ;;  %v254_v25 = vld [vmem:[%s1838_s1 + $0xc8] sm:$0xf] }
  0x24   : > { %v256_v26 = vld [vmem:[%s1838_s1 + $0xd0] sm:$0xf]  ;;  %253 = vst [vmem:[#allocation3 + $0x60] sm:$0xf] %v252_v24  ;;  %255 = vst [vmem:[#allocation3 + $0x64] sm:$0xf] %v254_v25 }
  0x25   : > { %257 = vst [vmem:[#allocation3 + $0x68] sm:$0xf] %v256_v26  ;;  %v258_v27 = vld [vmem:[%s1838_s1 + $0xd8] sm:$0xf]  ;;  %v260_v28 = vld [vmem:[%s1838_s1 + $0xe0] sm:$0xf] }
  0x26   : > { %v262_v29 = vld [vmem:[%s1838_s1 + $0xe8] sm:$0xf]  ;;  %259 = vst [vmem:[#allocation3 + $0x6c] sm:$0xf] %v258_v27  ;;  %261 = vst [vmem:[#allocation3 + $0x70] sm:$0xf] %v260_v28 }
  0x27   : > { %263 = vst [vmem:[#allocation3 + $0x74] sm:$0xf] %v262_v29  ;;  %v264_v30 = vld [vmem:[%s1838_s1 + $0xf0] sm:$0xf]  ;;  %v266_v31 = vld [vmem:[%s1838_s1 + $0xf8] sm:$0xf] }
  0x28   : > { %265 = vst [vmem:[#allocation3 + $0x78] sm:$0xf] %v264_v30  ;;  %267 = vst [vmem:[#allocation3 + $0x7c] sm:$0xf] %v266_v31 }
  0x29 PF: > { %p1235_p9 = scmp.ge.s32.totalorder %s1501_s22, 2 }
  0x2b   : > { %358 = sbr.rel (%p1235_p9) target bundleno = 64 (0x40), region = 61 }
  0x32   : > { %376 = sbr.rel (!%p1567_p3) target bundleno = 64 (0x40), region = 69  ;;  %s378_s30 = sand.u32 (%p1567_p3), 1, %s1489_s19  }
  0x33   : > { %s1283_s6 = sshll.u32 (%p1567_p3), %s1497_s21, 7  ;;  %s1236_s7 = sshll.u32 (%p1567_p3), %s378_s30, 6 }
  0x34   : > { %s1688_s10 = scalar_lea.vmem (%p1567_p3), %s1839_s2, %s1283_s6  ;;  %s380_s26 = scalar_lea.vmem (%p1567_p3), [#allocation4], %s1236_s7 }
  0x35   : > { %v1239_v32 = vld [vmem:[%s1688_s10 + $0x4] sm:$0xf] (%p1567_p3)  ;;  %v1240_v33 = vld [vmem:[%s1688_s10 + $0xc] sm:$0xf] (%p1567_p3)  ;;  %v1241_v34 = vld [vmem:[%s1688_s10 + $0x14] sm:$0xf] (%p1567_p3) }
  0x36   : > { %402 = vst [vmem:[%s380_s26] sm:$0xf] (%p1567_p3), %v1239_v32  ;;  %404 = vst [vmem:[%s380_s26 + $0x4] sm:$0xf] (%p1567_p3), %v1240_v33  ;;  %v1242_v35 = vld [vmem:[%s1688_s10 + $0x1c] sm:$0xf] (%p1567_p3) }
  0x37   : > { %v1243_v36 = vld [vmem:[%s1688_s10 + $0x24] sm:$0xf] (%p1567_p3)  ;;  %406 = vst [vmem:[%s380_s26 + $0x8] sm:$0xf] (%p1567_p3), %v1241_v34  ;;  %408 = vst [vmem:[%s380_s26 + $0xc] sm:$0xf] (%p1567_p3), %v1242_v35 }
  0x38   : > { %410 = vst [vmem:[%s380_s26 + $0x10] sm:$0xf] (%p1567_p3), %v1243_v36  ;;  %v1244_v37 = vld [vmem:[%s1688_s10 + $0x2c] sm:$0xf] (%p1567_p3)  ;;  %v1245_v38 = vld [vmem:[%s1688_s10 + $0x34] sm:$0xf] (%p1567_p3) }
  0x39   : > { %v1246_v39 = vld [vmem:[%s1688_s10 + $0x3c] sm:$0xf]  ;;  %412 = vst [vmem:[%s380_s26 + $0x14] sm:$0xf] %v1244_v37  ;;  %414 = vst [vmem:[%s380_s26 + $0x18] sm:$0xf] %v1245_v38 }
  0x3a   : > { %416 = vst [vmem:[%s380_s26 + $0x1c] sm:$0xf] %v1246_v39  ;;  %v1247_v40 = vld [vmem:[%s1688_s10 + $0x44] sm:$0xf]  ;;  %v1248_v41 = vld [vmem:[%s1688_s10 + $0x4c] sm:$0xf] }
  0x3b   : > { %v1249_v42 = vld [vmem:[%s1688_s10 + $0x54] sm:$0xf]  ;;  %418 = vst [vmem:[%s380_s26 + $0x20] sm:$0xf] %v1247_v40  ;;  %420 = vst [vmem:[%s380_s26 + $0x24] sm:$0xf] %v1248_v41 }
  0x3c   : > { %422 = vst [vmem:[%s380_s26 + $0x28] sm:$0xf] %v1249_v42  ;;  %v1250_v43 = vld [vmem:[%s1688_s10 + $0x5c] sm:$0xf]  ;;  %v1251_v44 = vld [vmem:[%s1688_s10 + $0x64] sm:$0xf] }
  0x3d   : > { %v1252_v45 = vld [vmem:[%s1688_s10 + $0x6c] sm:$0xf]  ;;  %424 = vst [vmem:[%s380_s26 + $0x2c] sm:$0xf] %v1250_v43  ;;  %426 = vst [vmem:[%s380_s26 + $0x30] sm:$0xf] %v1251_v44 }
  0x3e   : > { %428 = vst [vmem:[%s380_s26 + $0x34] sm:$0xf] %v1252_v45  ;;  %v1253_v46 = vld [vmem:[%s1688_s10 + $0x74] sm:$0xf]  ;;  %v1254_v47 = vld [vmem:[%s1688_s10 + $0x7c] sm:$0xf] }
  0x3f   : > { %430 = vst [vmem:[%s380_s26 + $0x38] sm:$0xf] %v1253_v46  ;;  %432 = vst [vmem:[%s380_s26 + $0x3c] sm:$0xf] %v1254_v47 }
  0x40 PF: > { %499 = sbr.rel (%p1575_p7) target bundleno = 345 (0x159), region = 114  ;;  %v1447_v48 = vld [vmem:[#allocation3 + $0x40] sm:$0xff] (!%p1575_p7)   ;;  %s1257_s11 = sshll.u32 (!%p1575_p7), %s1493_s20, 2  ;;  %v1449_v50 = vld [vmem:[#allocation3 + $0x48] sm:$0xff] (!%p1575_p7)   ;;  %v1451_v52 = vld [vmem:[#allocation3 + $0x50] sm:$0xff] (!%p1575_p7)   ;;  %v1503_v53 = vmov (!%p1575_p7), 0  }
  0x41   : > { %v1448_v49 = vld [vmem:[#allocation3] sm:$0xff] (!%p1575_p7)   ;;  %p549_p10 = scmp.lt.s32.totalorder (!%p1575_p7), %s1257_s11, 7  ;;  %1324 = vmatprep.subr.bf16.mxu0 (!%p1575_p7), %v1447_v48  ;;  %1388 = vmatprep.subr.bf16.mxu1 (!%p1575_p7), %v1447_v48  ;;  %v1450_v51 = vld [vmem:[#allocation3 + $0x8] sm:$0xff] (!%p1575_p7)   ;;  %s1260_s12 = sshll.u32 (!%p1575_p7), %s1493_s20, 4  ;;  %v1452_v54 = vld [vmem:[#allocation3 + $0x10] sm:$0xff] (!%p1575_p7)  }
  0x42   : > { %1325 = vmatpush3.bf16.msra.mxu0 (!%p1575_p7), %v1448_v49  ;;  %1396 = vmatpush3.bf16.msra.mxu1 (!%p1575_p7), %v1448_v49  ;;  %p561_p11 = scmp.lt.s32.totalorder (!%p1575_p7), %s1260_s12, 31  ;;  %v1453_v55 = vld [vmem:[#allocation3 + $0x58] sm:$0xff] (!%p1575_p7)   ;;  %v1455_v57 = vld [vmem:[#allocation3 + $0x60] sm:$0xff] (!%p1575_p7)   ;;  %v1457_v59 = vld [vmem:[#allocation3 + $0x68] sm:$0xff] (!%p1575_p7)   ;;  %s505_s25 = sand.u32 (!%p1575_p7), 1, %s1485_s18  }
  0x43   : > { %1326 = vmatprep.subr.bf16.mxu0 (!%p1575_p7), %v1449_v50  ;;  %1389 = vmatprep.subr.bf16.mxu1 (!%p1575_p7), %v1449_v50  ;;  %v1454_v56 = vld [vmem:[#allocation3 + $0x18] sm:$0xff] (!%p1575_p7)   ;;  %v1456_v58 = vld [vmem:[#allocation3 + $0x20] sm:$0xff] (!%p1575_p7)   ;;  %v1458_v0 = vld [vmem:[#allocation3 + $0x28] sm:$0xff] (!%p1575_p7)   ;;  %s1256_s27 = sshll.u32 (!%p1575_p7), %s505_s25, 6 }
  0x44   : > { %1446 = vset.pattern.permute.xlu1 (!%p1575_p7), %v1503_v53  ;;  %1445 = vset.pattern.permute.xlu0 (!%p1575_p7), %v1503_v53  ;;  %v1459_v3 = vld [vmem:[#allocation3 + $0x70] sm:$0xff] (!%p1575_p7)   ;;  %v1461_v7 = vld [vmem:[#allocation3 + $0x78] sm:$0xff] (!%p1575_p7)   ;;  %s1762_s30 = scalar_lea.vmem (!%p1575_p7), [#allocation4], %s1256_s27 }
  0x45   : > { %v1460_v4 = vld [vmem:[#allocation3 + $0x30] sm:$0xff] (!%p1575_p7)   ;;  %v1462_v8 = vld [vmem:[#allocation3 + $0x38] sm:$0xff] (!%p1575_p7)  }
  0x46   : > { %1327 = vmatpush3.bf16.msra.mxu0 (!%p1575_p7), %v1450_v51  ;;  %1397 = vmatpush3.bf16.msra.mxu1 (!%p1575_p7), %v1450_v51  ;;  %v1286_v50 = vld [vmem:[%s1762_s30] sm:$0xff] (!%p1575_p7)  }
  0x47   : > { %s1852_s11 = smov (!%p549_p10, %s1257_s11), 7  ;;  %1328 = vmatprep.subr.bf16.mxu0 %v1451_v52  ;;  %1390 = vmatprep.subr.bf16.mxu1 %v1451_v52  ;;  %s1854_s12 = smov (!%p561_p11, %s1260_s12), 31  ;;  %v1320_v51 = vld [vmem:[%s1762_s30 + $0x20] sm:$0xff]  }
  0x48   : > { %s1284_s28 = sshll.u32 %s1852_s11, 4  ;;  %s1261_s15 = sshll.u32 %s1854_s12, 3 }
  0x49   : > { %s1715_s14 = scalar_lea.vmem %s1837_s0, %s1284_s28  ;;  %s1725_s23 = scalar_lea.vmem %s1840_s3, %s1261_s15 }
  0x4a   : > { %1329 = vmatpush3.bf16.msra.mxu0 %v1452_v54  ;;  %1398 = vmatpush3.bf16.msra.mxu1 %v1452_v54  ;;  %v594_v60 = vld [vmem:[%s1715_s14 + $0x8] sm:$0xff]  ;;  %v916_v1 = vld [vmem:[%s1725_s23 + $0x10] sm:$0xff]  ;;  %v914_v2 = vld [vmem:[%s1725_s23] sm:$0xff]  ;;  %s1778_s9 = scalar_lea.vmem %s1842_s5, %s1261_s15 }
  0x4b   : > { %1330 = vmatprep.subr.bf16.mxu0 %v1453_v55  ;;  %1391 = vmatprep.subr.bf16.mxu1 %v1453_v55  ;;  %v598_v61 = vld [vmem:[%s1715_s14 + $0x28] sm:$0xff]  ;;  %v602_v62 = vunpack.c.l.s8.bf16 %v594_v60  ;;  %v917_v5 = vld [vmem:[%s1725_s23 + $0x18] sm:$0xff]  ;;  %v593_v9 = vld [vmem:[%s1715_s14] sm:$0xff]  ;;  %v604_v15 = vunpack.c.h.s8.bf16 %v594_v60 }
  0x4c   : > { %v610_v63 = vunpack.c.l.s8.bf16 %v598_v61  ;;  %942 = vperm.xlu1 %1446, %v916_v1   ;;  %932 = vperm.xlu0 %1445, %v914_v2   ;;  %v915_v6 = vld [vmem:[%s1725_s23 + $0x8] sm:$0xff]  ;;  %v597_v10 = vld [vmem:[%s1715_s14 + $0x20] sm:$0xff]  ;;  %v601_v13 = vunpack.c.l.s8.bf16 %v593_v9  ;;  %v612_v16 = vunpack.c.h.s8.bf16 %v598_v61  ;;  %v921_v17 = vld [vmem:[%s1725_s23 + $0x38] sm:$0xff]  ;;  %v603_v23 = vunpack.c.h.s8.bf16 %v593_v9 }
  0x4d   : > { %798 = vmatprep.mubr.bf16.mxu0 %v602_v62  ;;  %v919_v11 = vld [vmem:[%s1725_s23 + $0x28] sm:$0xff]  ;;  %v918_v12 = vld [vmem:[%s1725_s23 + $0x20] sm:$0xff]  ;;  %v609_v14 = vunpack.c.l.s8.bf16 %v597_v10  ;;  %v920_v18 = vld [vmem:[%s1725_s23 + $0x30] sm:$0xff]  ;;  %v611_v24 = vunpack.c.h.s8.bf16 %v597_v10  ;;  %v1304_v1 = vunpack.c.h.bf16 %v1320_v51 }
  0x4e   : > { %1331 = vmatpush3.bf16.msra.mxu0 %v1454_v56  ;;  %1399 = vmatpush3.bf16.msra.mxu1 %v1454_v56  ;;  %v596_v19 = vld [vmem:[%s1715_s14 + $0x18] sm:$0xff]  ;;  %v923_v21 = vld [vmem:[%s1725_s23 + $0x48] sm:$0xff]  ;;  %v922_v22 = vld [vmem:[%s1725_s23 + $0x40] sm:$0xff] }
  0x4f   : > { %1332 = vmatprep.subr.bf16.mxu0 %v1455_v57  ;;  %1392 = vmatprep.subr.bf16.mxu1 %v1455_v57  ;;  %v600_v20 = vld [vmem:[%s1715_s14 + $0x38] sm:$0xff]  ;;  %v606_v25 = vunpack.c.l.s8.bf16 %v596_v19  ;;  %v924_v28 = vld [vmem:[%s1725_s23 + $0x50] sm:$0xff]  ;;  %v927_v31 = vld [vmem:[%s1725_s23 + $0x68] sm:$0xff]  ;;  %v608_v35 = vunpack.c.h.s8.bf16 %v596_v19  ;;  %v1287_v57 = vunpack.c.l.bf16 %v1286_v50 }
  0x50   : > { %830 = vmatprep.mubr.bf16.mxu1 %v610_v63  ;;  %947 = vperm.xlu1 %1446, %v917_v5   ;;  %v614_v26 = vunpack.c.l.s8.bf16 %v600_v20  ;;  %v925_v27 = vld [vmem:[%s1725_s23 + $0x58] sm:$0xff]  ;;  %v595_v29 = vld [vmem:[%s1715_s14 + $0x10] sm:$0xff]  ;;  %v926_v32 = vld [vmem:[%s1725_s23 + $0x60] sm:$0xff]  ;;  %v616_v36 = vunpack.c.h.s8.bf16 %v600_v20  ;;  %v1288_v63 = vunpack.c.h.bf16 %v1286_v50 }
  0x51   : > { %937 = vperm.xlu0 %1445, %v915_v6   ;;  %v599_v30 = vld [vmem:[%s1715_s14 + $0x30] sm:$0xff]  ;;  %v605_v33 = vunpack.c.l.s8.bf16 %v595_v29  ;;  %v929_v37 = vld [vmem:[%s1725_s23 + $0x78] sm:$0xff]  ;;  %v607_v39 = vunpack.c.h.s8.bf16 %v595_v29 }
  0x52   : > { %1333 = vmatpush3.bf16.msra.mxu0 %v1456_v58  ;;  %1400 = vmatpush3.bf16.msra.mxu1 %v1456_v58  ;;  %v613_v34 = vunpack.c.l.s8.bf16 %v599_v30  ;;  %v928_v38 = vld [vmem:[%s1725_s23 + $0x70] sm:$0xff]  ;;  %v615_v40 = vunpack.c.h.s8.bf16 %v599_v30 }
  0x53   : > { %1334 = vmatprep.subr.bf16.mxu0 %v1457_v59  ;;  %1393 = vmatprep.subr.bf16.mxu1 %v1457_v59  ;;  %v1303_v59 = vunpack.c.l.bf16 %v1320_v51  ;;  %v1318_v50 = vld [vmem:[%s1762_s30 + $0x10] sm:$0xff]  }
  0x54   : > { %957 = vperm.xlu1 %1446, %v919_v11   ;;  %v1322_v51 = vld [vmem:[%s1762_s30 + $0x30] sm:$0xff]  }
  0x55   : > { %952 = vperm.xlu0 %1445, %v918_v12   ;;  %v1317_v12 = vld [vmem:[%s1762_s30 + $0x8] sm:$0xff]  }
  0x56   : > { %1335 = vmatpush3.bf16.msra.mxu0 %v1458_v0  ;;  %1401 = vmatpush3.bf16.msra.mxu1 %v1458_v0 }
  0x57   : > { %1336 = vmatprep.subr.bf16.mxu0 %v1459_v3  ;;  %1394 = vmatprep.subr.bf16.mxu1 %v1459_v3 }
  0x58   : > { %967 = vperm.xlu1 %1446, %v921_v17  }
  0x59   : > { %962 = vperm.xlu0 %1445, %v920_v18  }
  0x5a   : > { %1337 = vmatpush3.bf16.msra.mxu0 %v1460_v4  ;;  %1402 = vmatpush3.bf16.msra.mxu1 %v1460_v4 }
  0x5b   : > { %1338 = vmatprep.subr.bf16.mxu0 %v1461_v7  ;;  %1395 = vmatprep.subr.bf16.mxu1 %v1461_v7  ;;  %v1769_v7 = vld [vmem:[%s1841_s4] ss:$0 sm:$0xff] }
  0x5c   : > { %977 = vperm.xlu1 %1446, %v923_v21  }
  0x5d   : > { %972 = vperm.xlu0 %1445, %v922_v22   ;;  %v1291_v22 = vunpack.c.l.bf16 %v1317_v12 }
  0x5e   : > { %1339 = vmatpush3.bf16.msra.mxu0 %v1462_v8  ;;  %1403 = vmatpush3.bf16.msra.mxu1 %v1462_v8 }
  0x60   : > { %987 = vperm.xlu1 %1446, %v925_v27  }
  0x61   : > { %799 = vmatmul.mubr.bf16.vlgmr.msra.gmra.mrb[0].mxu0 %v601_v13  ;;  %831 = vmatmul.mubr.bf16.vlgmr.msra.gmra.mrb[0].mxu1 %v609_v14  ;;  %v1321_v13 = vld [vmem:[%s1762_s30 + $0x28] sm:$0xff]  }
  0x62   : > { %806 = vmatprep.mubr.bf16.mxu0 %v604_v15  ;;  %838 = vmatprep.mubr.bf16.mxu1 %v612_v16 }
  0x63   : > { %982 = vperm.xlu0 %1445, %v924_v28  }
  0x64   : > { %997 = vperm.xlu1 %1446, %v927_v31  }
  0x67   : > { %992 = vperm.xlu0 %1445, %v926_v32   ;;  %v1292_v32 = vunpack.c.h.bf16 %v1317_v12 }
  0x68   : > { %1007 = vperm.xlu1 %1446, %v929_v37  }
  0x69   : > { %807 = vmatmul.mubr.bf16.gmra.mrb[4].mxu0 %v603_v23  ;;  %839 = vmatmul.mubr.bf16.gmra.mrb[4].mxu1 %v611_v24  ;;  %v1307_v24 = vunpack.c.l.bf16 %v1321_v13 }
  0x6a   : > { %814 = vmatprep.mubr.bf16.mxu0 %v606_v25  ;;  %846 = vmatprep.mubr.bf16.mxu1 %v614_v26 }
  0x6b   : > { %1002 = vperm.xlu0 %1445, %v928_v38  }
  0x71   : > { %815 = vmatmul.mubr.bf16.gmra.mrb[8].mxu0 %v605_v33  ;;  %847 = vmatmul.mubr.bf16.gmra.mrb[8].mxu1 %v613_v34  ;;  %v1308_v34 = vunpack.c.h.bf16 %v1321_v13 }
  0x72   : > { %822 = vmatprep.mubr.bf16.mxu0 %v608_v35  ;;  %854 = vmatprep.mubr.bf16.mxu1 %v616_v36 }
  0x79   : > { %823 = vmatmul.mubr.bf16.gmra.mrb[12].mxu0 %v607_v39  ;;  %855 = vmatmul.mubr.bf16.gmra.mrb[12].mxu1 %v615_v40 }
  0xcb   : > { %v933_v41 = vpop.permute.xlu0 %932  ;;  %v1749_v42 = vpop.permute.xlu1 %942 }
  0xcf   : > { %v1751_v44 = vpop.permute.xlu1 %947 }
  0xd0   : > { %v938_v43 = vpop.permute.xlu0 %937 }
  0xd3   : > { %v1756_v46 = vpop.permute.xlu1 %957 }
  0xd4   : > { %v1753_v45 = vpop.permute.xlu0 %952 }
  0xd7   : > { %v1760_v48 = vpop.permute.xlu1 %967 }
  0xd8   : > { %v1758_v47 = vpop.permute.xlu0 %962 }
  0xdb   : > { %v978_v6 = vpop.permute.xlu1 %977 }
  0xdc   : > { %v973_v49 = vpop.permute.xlu0 %972 }
  0xdf   : > { %v988_v39 = vpop.permute.xlu1 %987 }
  0xe2   : > { %v983_v14 = vpop.permute.xlu0 %982 }
  0xe3   : > { %v998_v12 = vpop.permute.xlu1 %997 }
 0x134   : > { %v1340_v52 = vpop.f32.mrb[0].mxu0  ;;  %v1364_v53 = vpop.f32.mrb[0].mxu1 }
 0x135   : > { %v1341_v54 = vpop.f32.mrb[1].mxu0  ;;  %v1365_v55 = vpop.f32.mrb[1].mxu1 }
 0x136   : > { %v1342_v56 = vadd.f32 %v1341_v54, %v1340_v52  ;;  %v1366_v58 = vadd.f32 %v1365_v55, %v1364_v53  ;;  %v1343_v60 = vpop.f32.mrb[2].mxu0  ;;  %v1367_v61 = vpop.f32.mrb[2].mxu1 }
 0x137   : > { %v1344_v62 = vpop.f32.mrb[3].mxu0  ;;  %v1368_v0 = vpop.f32.mrb[3].mxu1 }
 0x138   : > { %v1010_v2 = vmul.f32 %v1342_v56, %v933_v41  ;;  %v1018_v3 = vmul.f32 %v1366_v58, %v973_v49  ;;  %v1345_v4 = vadd.f32 %v1344_v62, %v1343_v60  ;;  %v1369_v5 = vadd.f32 %v1368_v0, %v1367_v61  ;;  %v993_v52 = vpop.permute.xlu0 %992 }
 0x139   : > { %v1311_v61 = vunpack.c.l.bf16 %v1322_v51 }
 0x13a   : > { %v1058_v8 = vadd.f32 %v1287_v57, %v1010_v2  ;;  %v1066_v9 = vadd.f32 %v1303_v59, %v1018_v3  ;;  %v1011_v10 = vmul.f32 %v1345_v4, %v938_v43  ;;  %v1019_v11 = vmul.f32 %v1369_v5, %v978_v6 }
 0x13b   : > { %v1295_v59 = vunpack.c.l.bf16 %v1318_v50  ;;  %v1296_v4 = vunpack.c.h.bf16 %v1318_v50  ;;  %v1312_v6 = vunpack.c.h.bf16 %v1322_v51 }
 0x13c   : > { %v1081_v15 = vadd.f32 %v1769_v7, %v1058_v8  ;;  %v1089_v16 = vadd.f32 %v1769_v7, %v1066_v9  ;;  %v1059_v17 = vadd.f32 %v1288_v63, %v1011_v10  ;;  %v1067_v18 = vadd.f32 %v1304_v1, %v1019_v11  ;;  %v1346_v19 = vpop.f32.mrb[4].mxu0  ;;  %v1370_v20 = vpop.f32.mrb[4].mxu1 }
 0x13d   : > { %v1347_v21 = vpop.f32.mrb[5].mxu0  ;;  %v1371_v23 = vpop.f32.mrb[5].mxu1 }
 0x13e   : > { %1097 = vst [vmem:[%s1778_s9] sm:$0xff] %v1081_v15  ;;  %1105 = vst [vmem:[%s1778_s9 + $0x40] sm:$0xff] %v1089_v16  ;;  %v1082_v25 = vadd.f32 %v1769_v7, %v1059_v17  ;;  %v1090_v26 = vadd.f32 %v1769_v7, %v1067_v18  ;;  %v1348_v27 = vadd.f32 %v1347_v21, %v1346_v19  ;;  %v1349_v29 = vpop.f32.mrb[6].mxu0  ;;  %v1373_v30 = vpop.f32.mrb[6].mxu1  ;;  %v1319_v17 = vld [vmem:[%s1762_s30 + $0x18] sm:$0xff]  }
 0x13f   : > { %v1372_v28 = vadd.f32 %v1371_v23, %v1370_v20  ;;  %v1350_v31 = vpop.f32.mrb[7].mxu0  ;;  %v1374_v33 = vpop.f32.mrb[7].mxu1  ;;  %v1323_v18 = vld [vmem:[%s1762_s30 + $0x38] sm:$0xff]  }
 0x140   : > { %1098 = vst [vmem:[%s1778_s9 + $0x8] sm:$0xff] %v1082_v25  ;;  %1106 = vst [vmem:[%s1778_s9 + $0x48] sm:$0xff] %v1090_v26  ;;  %v1012_v35 = vmul.f32 %v1348_v27, %v1749_v42  ;;  %v1351_v37 = vadd.f32 %v1350_v31, %v1349_v29  ;;  %v1375_v38 = vadd.f32 %v1374_v33, %v1373_v30  ;;  %v1003_v19 = vpop.permute.xlu0 %1002  ;;  %v1299_v26 = vunpack.c.l.bf16 %v1319_v17 }
 0x141   : > { %v1020_v36 = vmul.f32 %v1372_v28, %v983_v14  ;;  %v1315_v28 = vunpack.c.l.bf16 %v1323_v18 }
 0x142   : > { %v1060_v40 = vadd.f32 %v1291_v22, %v1012_v35  ;;  %v1013_v43 = vmul.f32 %v1351_v37, %v1751_v44  ;;  %v1021_v49 = vmul.f32 %v1375_v38, %v988_v39  ;;  %v1300_v35 = vunpack.c.h.bf16 %v1319_v17 }
 0x143   : > { %v1068_v41 = vadd.f32 %v1307_v24, %v1020_v36  ;;  %v1316_v37 = vunpack.c.h.bf16 %v1323_v18 }
 0x144   : > { %v1083_v53 = vadd.f32 %v1769_v7, %v1060_v40  ;;  %v1061_v55 = vadd.f32 %v1292_v32, %v1013_v43  ;;  %v1069_v42 = vadd.f32 %v1308_v34, %v1021_v49  ;;  %v1352_v56 = vpop.f32.mrb[8].mxu0  ;;  %v1376_v57 = vpop.f32.mrb[8].mxu1 }
 0x145   : > { %v1091_v54 = vadd.f32 %v1769_v7, %v1068_v41  ;;  %v1353_v58 = vpop.f32.mrb[9].mxu0  ;;  %v1377_v60 = vpop.f32.mrb[9].mxu1 }
 0x146   : > { %1099 = vst [vmem:[%s1778_s9 + $0x10] sm:$0xff] %v1083_v53  ;;  %v1084_v44 = vadd.f32 %v1769_v7, %v1061_v55  ;;  %v1092_v62 = vadd.f32 %v1769_v7, %v1069_v42  ;;  %v1354_v63 = vadd.f32 %v1353_v58, %v1352_v56  ;;  %v1378_v0 = vadd.f32 %v1377_v60, %v1376_v57  ;;  %v1355_v1 = vpop.f32.mrb[10].mxu0  ;;  %v1379_v2 = vpop.f32.mrb[10].mxu1 }
 0x147   : > { %1107 = vst [vmem:[%s1778_s9 + $0x50] sm:$0xff] %v1091_v54  ;;  %v1356_v3 = vpop.f32.mrb[11].mxu0  ;;  %v1380_v5 = vpop.f32.mrb[11].mxu1 }
 0x148   : > { %1100 = vst [vmem:[%s1778_s9 + $0x18] sm:$0xff] %v1084_v44  ;;  %1108 = vst [vmem:[%s1778_s9 + $0x58] sm:$0xff] %v1092_v62  ;;  %v1014_v8 = vmul.f32 %v1354_v63, %v1753_v45  ;;  %v1022_v9 = vmul.f32 %v1378_v0, %v993_v52  ;;  %v1357_v10 = vadd.f32 %v1356_v3, %v1355_v1  ;;  %v1008_v43 = vpop.permute.xlu1 %1007 }
 0x149   : > { %v1381_v11 = vadd.f32 %v1380_v5, %v1379_v2 }
 0x14a   : > { %v1062_v13 = vadd.f32 %v1295_v59, %v1014_v8  ;;  %v1070_v14 = vadd.f32 %v1311_v61, %v1022_v9  ;;  %v1015_v15 = vmul.f32 %v1357_v10, %v1756_v46 }
 0x14b   : > { %v1023_v16 = vmul.f32 %v1381_v11, %v998_v12 }
 0x14c   : > { %v1085_v20 = vadd.f32 %v1769_v7, %v1062_v13  ;;  %v1093_v21 = vadd.f32 %v1769_v7, %v1070_v14  ;;  %v1063_v22 = vadd.f32 %v1296_v4, %v1015_v15  ;;  %v1358_v23 = vpop.f32.mrb[12].mxu0  ;;  %v1382_v24 = vpop.f32.mrb[12].mxu1 }
 0x14d   : > { %v1071_v45 = vadd.f32 %v1312_v6, %v1023_v16  ;;  %v1359_v25 = vpop.f32.mrb[13].mxu0  ;;  %v1383_v27 = vpop.f32.mrb[13].mxu1 }
 0x14e   : > { %1101 = vst [vmem:[%s1778_s9 + $0x20] sm:$0xff] %v1085_v20  ;;  %1109 = vst [vmem:[%s1778_s9 + $0x60] sm:$0xff] %v1093_v21  ;;  %v1086_v46 = vadd.f32 %v1769_v7, %v1063_v22  ;;  %v1360_v30 = vadd.f32 %v1359_v25, %v1358_v23  ;;  %v1384_v31 = vadd.f32 %v1383_v27, %v1382_v24  ;;  %v1361_v32 = vpop.f32.mrb[14].mxu0  ;;  %v1385_v33 = vpop.f32.mrb[14].mxu1 }
 0x14f   : > { %v1094_v29 = vadd.f32 %v1769_v7, %v1071_v45  ;;  %v1362_v34 = vpop.f32.mrb[15].mxu0  ;;  %v1386_v36 = vpop.f32.mrb[15].mxu1 }
 0x150   : > { %1102 = vst [vmem:[%s1778_s9 + $0x28] sm:$0xff] %v1086_v46  ;;  %v1016_v38 = vmul.f32 %v1360_v30, %v1758_v47  ;;  %v1024_v39 = vmul.f32 %v1384_v31, %v1003_v19  ;;  %v1363_v40 = vadd.f32 %v1362_v34, %v1361_v32  ;;  %v1387_v41 = vadd.f32 %v1386_v36, %v1385_v33 }
 0x151   : > { %1110 = vst [vmem:[%s1778_s9 + $0x68] sm:$0xff] %v1094_v29 }
 0x152   : > { %v1064_v49 = vadd.f32 %v1299_v26, %v1016_v38  ;;  %v1072_v50 = vadd.f32 %v1315_v28, %v1024_v39  ;;  %v1017_v51 = vmul.f32 %v1363_v40, %v1760_v48  ;;  %v1025_v52 = vmul.f32 %v1387_v41, %v1008_v43 }
 0x154   : > { %v1087_v53 = vadd.f32 %v1769_v7, %v1064_v49  ;;  %v1095_v54 = vadd.f32 %v1769_v7, %v1072_v50  ;;  %v1065_v55 = vadd.f32 %v1300_v35, %v1017_v51  ;;  %v1073_v42 = vadd.f32 %v1316_v37, %v1025_v52 }
 0x156   : > { %1103 = vst [vmem:[%s1778_s9 + $0x30] sm:$0xff] %v1087_v53  ;;  %1111 = vst [vmem:[%s1778_s9 + $0x70] sm:$0xff] %v1095_v54  ;;  %v1088_v47 = vadd.f32 %v1769_v7, %v1065_v55  ;;  %v1096_v56 = vadd.f32 %v1769_v7, %v1073_v42 }
 0x158   : > { %1104 = vst [vmem:[%s1778_s9 + $0x38] sm:$0xff] %v1088_v47  ;;  %1112 = vst [vmem:[%s1778_s9 + $0x78] sm:$0xff] %v1096_v56 }
 0x159 PF: > { %s15_s22 = sadd.s32 1, %s1501_s22   ;;  %s1845_s18 = smov %s1489_s19 }
 0x15a   : > { %p12_p12 = scmp.ge.s32.totalorder %s15_s22, 4   ;;  %s1846_s19 = smov %s1580_s29 }
 0x15b   : > { %s1847_s20 = smov %s1497_s21  ;;  %s1848_s21 = smov %s1850_s24 }
 0x15c   :  { %14 = sbr.rel (!%p12_p12) target bundleno = 3 (0x3), region = 176 }

</bundles_post_ra>
